<compile_context>
chip_gen: v7x
topology: tpu7x:2x2x1
jax: 0.10.0
libtpu: 0.0.40
codegen_flags: <defaults>
</compile_context>

<pallas_src>
import functools
import numpy as np

import jax
import jax.numpy as jnp
from jax.experimental import pallas as pl
from jax.experimental.pallas import tpu as pltpu

_INV_SQRT2 = 0.7071067811865476
_POS_MASK = 0x7FFFFFFF   # keep hash state non-negative -> arithmetic >> == logical >>
_SALT1 = 0x3C6EF372      # salt for the post-GELU dropout mask
_SALT2 = 0x1B873593      # salt for the post-fc2 dropout mask


def _i32(v):
    """Python unsigned 32-bit constant -> two's-complement int32 value."""
    v &= 0xFFFFFFFF
    return v - (1 << 32) if v >= (1 << 31) else v


def _keep_mask(seed, salt, shape, row_offset, row_stride, drop_rate):
    """Bernoulli(1 - drop_rate) keep mask from a stateless murmur-style hash.

    Uses only int32 mul/xor/and and arithmetic shifts on non-negative values,
    so it lowers on both Mosaic (VPU) and the CPU interpreter.
    """
    rows = jax.lax.broadcasted_iota(jnp.int32, shape, 0) + row_offset
    cols = jax.lax.broadcasted_iota(jnp.int32, shape, 1)
    v = rows * jnp.int32(row_stride) + cols                      # global element index
    v = (v ^ seed ^ jnp.int32(_i32(salt))) & jnp.int32(_POS_MASK)
    v = (v * jnp.int32(_i32(0x85EBCA6B))) & jnp.int32(_POS_MASK)
    v = v ^ (v >> 13)
    v = (v * jnp.int32(_i32(0xC2B2AE35))) & jnp.int32(_POS_MASK)
    v = v ^ (v >> 16)
    u = (v & jnp.int32(0x7FFFFF)).astype(jnp.float32) * jnp.float32(1.0 / (1 << 23))
    return u >= jnp.float32(drop_rate)


def _mlp_kernel(seed_ref, x_ref, w1_ref, b1_ref, w2_ref, b2_ref, o_ref, *,
                drop_rate, training, row_tile, mlp_dim, dim):
    """One row-tile: fc1 -> exact GELU -> dropout -> fc2 -> dropout."""
    apply_drop = training and drop_rate > 0.0
    full_drop = apply_drop and drop_rate >= 1.0
    inv_keep = 1.0 / (1.0 - drop_rate) if (apply_drop and not full_drop) else 1.0
    seed = seed_ref[0]

    # fc1 on the MXU: native-dtype (e.g. bf16) operands, f32 accumulation.
    h = jnp.dot(x_ref[...], w1_ref[...], preferred_element_type=jnp.float32)
    h = h + b1_ref[...].astype(jnp.float32)

    # Exact GELU (PyTorch default approximate='none'): 0.5*x*(1 + erf(x/sqrt(2))).
    h = 0.5 * h * (1.0 + jax.lax.erf(h * _INV_SQRT2))

    if apply_drop:
        if full_drop:
            h = jnp.zeros_like(h)
        else:
            row0 = pl.program_id(0) * row_tile
            keep1 = _keep_mask(seed, _SALT1, h.shape, row0, mlp_dim, drop_rate)
            h = jnp.where(keep1, h, 0.0) * jnp.float32(inv_keep)

    # fc2 on the MXU: cast the f32 intermediate back to the weight dtype.
    y = jnp.dot(h.astype(w2_ref.dtype), w2_ref[...],
                preferred_element_type=jnp.float32)
    y = y + b2_ref[...].astype(jnp.float32)

    if apply_drop:
        if full_drop:
            y = jnp.zeros_like(y)
        else:
            row0 = pl.program_id(0) * row_tile
            keep2 = _keep_mask(seed, _SALT2, y.shape, row0, dim, drop_rate)
            y = jnp.where(keep2, y, 0.0) * jnp.float32(inv_keep)

    o_ref[...] = y.astype(o_ref.dtype)


def mlp_layer(x, w1, b1, w2, b2, *, drop_rate=0.1, training=False, seed=0,
              row_tile=256):
    """x: [B, S, dim]; w1: [dim, mlp_dim]; w2: [mlp_dim, dim] (already in->out,
    i.e. the transpose of PyTorch nn.Linear.weight)."""
    B, S, dim = x.shape
    mlp_dim = w1.shape[1]
    N = B * S
    row_tile = min(row_tile, N)
    assert N % row_tile == 0, "batch*seq must be divisible by row_tile"
    # NOTE: for peak throughput dim / mlp_dim should be multiples of 128
    # (lane-dense stores, full MXU lanes); smaller dims still run correctly.

    x2 = x.reshape(N, dim)
    b1_2 = b1.reshape(1, mlp_dim)
    b2_2 = b2.reshape(1, dim)
    seed_arr = jnp.asarray([seed], dtype=jnp.int32)

    kernel = functools.partial(
        _mlp_kernel, drop_rate=float(drop_rate), training=bool(training),
        row_tile=row_tile, mlp_dim=mlp_dim, dim=dim)

    # VMEM budget: weights/biases once (single-buffered) + double-buffered
    # x/out tiles + f32 intermediate, with headroom; clamped to 64 MiB (v7x).
    w_bytes = sum(int(np.prod(a.shape)) * a.dtype.itemsize
                  for a in (w1, b1_2, w2, b2_2))
    tile_bytes = row_tile * dim * x.dtype.itemsize
    h_bytes = row_tile * mlp_dim * 4
    vmem_limit = int(min(max(2 * (w_bytes + 4 * tile_bytes + h_bytes),
                             32 * 1024 * 1024),
                         64 * 1024 * 1024))

    cost = pl.CostEstimate(
        flops=4 * N * dim * mlp_dim,                     # two matmuls, 2 flop/MAC
        transcendentals=N * mlp_dim,                     # erf per fc1 output
        bytes_accessed=w_bytes + 2 * N * dim * x.dtype.itemsize)

    grid = (N // row_tile,)
    out2 = pl.pallas_call(
        kernel,
        out_shape=jax.ShapeDtypeStruct((N, dim), x.dtype),
        grid_spec=pltpu.PrefetchScalarGridSpec(
            num_scalar_prefetch=1,   # seed -> SMEM
            grid=grid,
            in_specs=[
                pl.BlockSpec((row_tile, dim), lambda i, seed: (i, 0)),   # x tile
                # Grid-invariant operands: single-buffer to halve VMEM footprint.
                pl.BlockSpec((dim, mlp_dim), lambda i, seed: (0, 0),
                             pipeline_mode=pl.Buffered(1)),              # w1
                pl.BlockSpec((1, mlp_dim), lambda i, seed: (0, 0),
                             pipeline_mode=pl.Buffered(1)),              # b1
                pl.BlockSpec((mlp_dim, dim), lambda i, seed: (0, 0),
                             pipeline_mode=pl.Buffered(1)),              # w2
                pl.BlockSpec((1, dim), lambda i, seed: (0, 0),
                             pipeline_mode=pl.Buffered(1)),              # b2
            ],
            out_specs=pl.BlockSpec((row_tile, dim), lambda i, seed: (i, 0)),
        ),
        compiler_params=pltpu.CompilerParams(
            # Tiles are fully independent (stateless hash dropout) -> parallel,
            # so v7x's two TensorCores can split the row axis.
            dimension_semantics=("parallel",),
            vmem_limit_bytes=vmem_limit),
        cost_estimate=cost,
    )(seed_arr, x2, w1, b1_2, w2, b2_2)

    return out2.reshape(B, S, dim)


def mlp_ref(x, w1, b1, w2, b2):
    """Pure-JAX eval-mode reference (dropout = identity), full-f32 precision."""
    h = jnp.dot(x, w1, precision=jax.lax.Precision.HIGHEST) + b1
    h = 0.5 * h * (1.0 + jax.lax.erf(h * _INV_SQRT2))
    return jnp.dot(h, w2, precision=jax.lax.Precision.HIGHEST) + b2


if __name__ == "__main__":
    dim, mlp_dim = 128, 256
    B, S = 2, 256                      # N = 512 rows -> 2 row tiles of 256
    drop_rate = 0.1

    key = jax.random.PRNGKey(0)
    kx, kw1, kb1, kw2, kb2 = jax.random.split(key, 5)

    x = jax.random.normal(kx, (B, S, dim), dtype=jnp.float32)
    # PyTorch nn.Linear stores weight as (out, in); we keep (in, out) directly.
    w1 = jax.random.normal(kw1, (dim, mlp_dim), dtype=jnp.float32) / np.sqrt(dim)
    b1 = jax.random.normal(kb1, (mlp_dim,), dtype=jnp.float32) * 0.01
    w2 = jax.random.normal(kw2, (mlp_dim, dim), dtype=jnp.float32) / np.sqrt(mlp_dim)
    b2 = jax.random.normal(kb2, (dim,), dtype=jnp.float32) * 0.01

    # --- eval mode, f32 (dropout is identity): check against pure-JAX reference.
    y_eval = jax.block_until_ready(
        mlp_layer(x, w1, b1, w2, b2, drop_rate=drop_rate, training=False))
    y_ref = mlp_ref(x, w1, b1, w2, b2)
    np.testing.assert_allclose(np.asarray(y_eval), np.asarray(y_ref),
                               rtol=2e-2, atol=2e-2)

    # --- eval mode, bf16 operands (f32 accumulation inside the kernel).
    xb, w1b, b1b, w2b, b2b = (a.astype(jnp.bfloat16) for a in (x, w1, b1, w2, b2))
    y_bf16 = jax.block_until_ready(
        mlp_layer(xb, w1b, b1b, w2b, b2b, drop_rate=drop_rate, training=False))
    np.testing.assert_allclose(np.asarray(y_bf16, dtype=np.float32),
                               np.asarray(y_ref), rtol=0.15, atol=0.15)

    # --- training mode: in-kernel stateless-hash dropout (deterministic seed).
    y_train = jax.block_until_ready(
        mlp_layer(xb, w1b, b1b, w2b, b2b, drop_rate=drop_rate, training=True,
                  seed=1234))
    assert y_train.shape == (B, S, dim)
    assert bool(jnp.all(jnp.isfinite(y_train.astype(jnp.float32))))
    zero_frac = float(jnp.mean((y_train == 0).astype(jnp.float32)))
    assert 0.03 < zero_frac < 0.20, f"unexpected dropout zero fraction {zero_frac}"

    print("KERNEL_OK")
</pallas_src>

<mosaic_0001>
module attributes {stable_mosaic.version = 11 : i64} {
  func.func @_mlp_kernel(%arg0: i32, %arg1: memref<1xi32, #tpu.memory_space<smem>>, %arg2: memref<256x128xf32, #tpu.memory_space<vmem>>, %arg3: memref<128x256xf32, #tpu.memory_space<vmem>>, %arg4: memref<1x256xf32, #tpu.memory_space<vmem>>, %arg5: memref<256x128xf32, #tpu.memory_space<vmem>>, %arg6: memref<1x128xf32, #tpu.memory_space<vmem>>, %arg7: memref<256x128xf32, #tpu.memory_space<vmem>>) attributes {dimension_semantics = [#tpu.dimension_semantics<parallel>], iteration_bounds = array<i64: 2>, scalar_prefetch = 1 : i64, scratch_operands = 0 : i64, tpu.core_type = #tpu.core_type<tc>, window_params = [{transform_indices = @transform_0, window_bounds = array<i64: 256, 128>}, {pipeline_mode = #tpu.pipeline_mode<synchronous>, transform_indices = @transform_1, window_bounds = array<i64: 128, 256>}, {pipeline_mode = #tpu.pipeline_mode<synchronous>, transform_indices = @transform_2, window_bounds = array<i64: 1, 256>}, {pipeline_mode = #tpu.pipeline_mode<synchronous>, transform_indices = @transform_3, window_bounds = array<i64: 256, 128>}, {pipeline_mode = #tpu.pipeline_mode<synchronous>, transform_indices = @transform_4, window_bounds = array<i64: 1, 128>}, {transform_indices = @transform_5, window_bounds = array<i64: 256, 128>}]} {
    %c0 = arith.constant 0 : index
    %c0_0 = arith.constant 0 : index
    %0 = vector.load %arg2[%c0, %c0_0] : memref<256x128xf32, #tpu.memory_space<vmem>>, vector<256x128xf32>
    %c0_1 = arith.constant 0 : index
    %c0_2 = arith.constant 0 : index
    %1 = vector.load %arg3[%c0_1, %c0_2] : memref<128x256xf32, #tpu.memory_space<vmem>>, vector<128x256xf32>
    %cst = arith.constant dense<0.000000e+00> : vector<256x256xf32>
    %2 = tpu.matmul %0, %1, %cst {dimension_numbers = #tpu.dot_dimension_numbers<[1], [0], [0], [1], [0, 0, 1, 1], [], []>} : vector<256x128xf32>, vector<128x256xf32>, vector<256x256xf32> -> vector<256x256xf32>
    %c0_3 = arith.constant 0 : index
    %c0_4 = arith.constant 0 : index
    %3 = vector.load %arg4[%c0_3, %c0_4] : memref<1x256xf32, #tpu.memory_space<vmem>>, vector<1x256xf32>
    %4 = vector.broadcast %3 : vector<1x256xf32> to vector<256x256xf32>
    %5 = arith.addf %2, %4 : vector<256x256xf32>
    %cst_5 = arith.constant 5.000000e-01 : f32
    %6 = vector.broadcast %cst_5 : f32 to vector<256x256xf32>
    %7 = arith.mulf %6, %5 : vector<256x256xf32>
    %cst_6 = arith.constant 0.707106769 : f32
    %8 = vector.broadcast %cst_6 : f32 to vector<256x256xf32>
    %9 = arith.mulf %5, %8 : vector<256x256xf32>
    %10 = math.erf %9 : vector<256x256xf32>
    %cst_7 = arith.constant 1.000000e+00 : f32
    %11 = vector.broadcast %cst_7 : f32 to vector<256x256xf32>
    %12 = arith.addf %11, %10 : vector<256x256xf32>
    %13 = arith.mulf %7, %12 : vector<256x256xf32>
    %c0_8 = arith.constant 0 : index
    %c0_9 = arith.constant 0 : index
    %14 = vector.load %arg5[%c0_8, %c0_9] : memref<256x128xf32, #tpu.memory_space<vmem>>, vector<256x128xf32>
    %cst_10 = arith.constant dense<0.000000e+00> : vector<256x128xf32>
    %15 = tpu.matmul %13, %14, %cst_10 {dimension_numbers = #tpu.dot_dimension_numbers<[1], [0], [0], [1], [0, 0, 1, 1], [], []>} : vector<256x256xf32>, vector<256x128xf32>, vector<256x128xf32> -> vector<256x128xf32>
    %c0_11 = arith.constant 0 : index
    %c0_12 = arith.constant 0 : index
    %16 = vector.load %arg6[%c0_11, %c0_12] : memref<1x128xf32, #tpu.memory_space<vmem>>, vector<1x128xf32>
    %17 = vector.broadcast %16 : vector<1x128xf32> to vector<256x128xf32>
    %18 = arith.addf %15, %17 : vector<256x128xf32>
    %c0_13 = arith.constant 0 : index
    %c0_14 = arith.constant 0 : index
    %19 = vector.load %arg7[%c0_13, %c0_14] : memref<256x128xf32, #tpu.memory_space<vmem>>, vector<256x128xf32>
    tpu.vector_store %arg7[%c0_13, %c0_14], %18 {strides = array<i32>} : memref<256x128xf32, #tpu.memory_space<vmem>>, vector<256x128xf32>,
    return
  }
  func.func @transform_0(%arg0: i32, %arg1: memref<1xi32, #tpu.memory_space<smem>>) -> (i32, i32) {
    %c0_i32 = arith.constant 0 : i32
    %c0_i32_0 = arith.constant 0 : i32
    return %arg0, %c0_i32 : i32, i32
  }
  func.func @transform_1(%arg0: i32, %arg1: memref<1xi32, #tpu.memory_space<smem>>) -> (i32, i32) {
    %c0_i32 = arith.constant 0 : i32
    %c0_i32_0 = arith.constant 0 : i32
    %c0_i32_1 = arith.constant 0 : i32
    return %c0_i32, %c0_i32_0 : i32, i32
  }
  func.func @transform_2(%arg0: i32, %arg1: memref<1xi32, #tpu.memory_space<smem>>) -> (i32, i32) {
    %c0_i32 = arith.constant 0 : i32
    %c0_i32_0 = arith.constant 0 : i32
    %c0_i32_1 = arith.constant 0 : i32
    return %c0_i32, %c0_i32_0 : i32, i32
  }
  func.func @transform_3(%arg0: i32, %arg1: memref<1xi32, #tpu.memory_space<smem>>) -> (i32, i32) {
    %c0_i32 = arith.constant 0 : i32
    %c0_i32_0 = arith.constant 0 : i32
    %c0_i32_1 = arith.constant 0 : i32
    return %c0_i32, %c0_i32_0 : i32, i32
  }
  func.func @transform_4(%arg0: i32, %arg1: memref<1xi32, #tpu.memory_space<smem>>) -> (i32, i32) {
    %c0_i32 = arith.constant 0 : i32
    %c0_i32_0 = arith.constant 0 : i32
    %c0_i32_1 = arith.constant 0 : i32
    return %c0_i32, %c0_i32_0 : i32, i32
  }
  func.func @transform_5(%arg0: i32, %arg1: memref<1xi32, #tpu.memory_space<smem>>) -> (i32, i32) {
    %c0_i32 = arith.constant 0 : i32
    %c0_i32_0 = arith.constant 0 : i32
    return %arg0, %c0_i32 : i32, i32
  }
}

</mosaic_0001>

<bundles_post_ra>
// kernel: tpu_custom_call.1
= control target key start
LH: loop header
LB: loop body
LE: loop exit
PB: predicated region body
PF: predicated region fallthrough
CT: control target
= control target key end

     0   :  { %12 = vsyncpa [#allocation5], 0  ;;  %s2565_s0 = inlined_call_operand.<no memory space> [shape: s32[1], index: 0, kind: input, shape index: {}]   ;;  %s2566_s1 = inlined_call_operand.hbm [shape: f32[512,128], index: 1, kind: input, shape index: {}]   ;;  %s2567_s2 = inlined_call_operand.hbm [shape: f32[128,256], index: 2, kind: input, shape index: {}]   ;;  %s2568_s3 = inlined_call_operand.vmem [shape: f32[1,256], index: 3, kind: input, shape index: {}]   ;;  %s2569_s4 = inlined_call_operand.hbm [shape: f32[256,128], index: 4, kind: input, shape index: {}]   ;;  %s2570_s5 = inlined_call_operand.vmem [shape: f32[1,128], index: 5, kind: input, shape index: {}]   ;;  %s2571_s6 = inlined_call_operand.hbm [shape: f32[512,128], index: 6, kind: output, shape index: {}]  }
   0x1   :  { %14 = vsyncpa [#allocation5 + $0x1], 0 }
   0x2   :  { %15 = vsyncpa [#allocation8], 0 }
   0x3   :  { %16 = vsyncpa [#allocation6], 0 }
   0x4   :  { %18 = vsyncpa [#allocation6 + $0x1], 0  ;;  %s1872_s0 = smov 0   ;;  %s1874_s21 = smov 0  }
   0x5   :  { %s1876_s22 = smov 0   ;;  %s1878_s23 = smov 0  }
   0x6 LB: > { %s1893_s24 = sadd.s32 4294967295, %s1823_s23   ;;  %s1331_s25 = sadd.s32 4294967294, %s1823_s23   ;;  %s1823_s23 = sphi %s1878_s23, %s2591_s23   ;;  %s1819_s22 = sphi %s1876_s22, %s2590_s22   ;;  %s1815_s21 = sphi %s1874_s21, %s2589_s21   ;;  %s1811_s0 = sphi %s1872_s0, %s2588_s0  }
   0x7   : > { %p44_p0 = scmp.ne.s32.totalorder %s1815_s21, %s1811_s0  ;;  %p2572_p1 = scmp.eq.s32.totalorder %s1893_s24, 0 }
   0x8   : > { %p158_p3 = scmp.eq.s32.totalorder %s1331_s25, 1  ;;  %p1332_p5 = scmp.ge.s32.totalorder %s1823_s23, 1 }
   0x9   : > { %p1902_p4 = por %p2572_p1, %p44_p0  ;;  %p165_p7 = scmp.lt.s32.totalorder %s1823_s23, 3 }
   0xa   : > { %p1907_p6 = por %p158_p3, %p44_p0  ;;  %s1825_s29 = smov [#allocation7]  }
   0xb   : > { %s2575_s26 = scalar_select %p1902_p4, 1, 0 }
   0xc   : > { %s2576_s27 = scalar_select %p1907_p6, 1, 0 }
   0xd   : > { %p1912_p8 = pnand %p1332_p5, %p165_p7  ;;  %s177_s30 = sshll.u32 %s1825_s29, 4  ;;  %s1916_s30 = int_to_ptr.vmem [resolvable:$true] %s177_s30 }
   0xe   : > { %s1826_s8 = smov [#allocation9]   ;;  %s1667_s12 = scalar_lea.hbm %s2567_s2, 4096 }
   0xf   : > { %p1476_p9 = pneg %p1912_p8  ;;  %s193_s9 = sshll.u32 %s1826_s8, 4  ;;  %s1927_s9 = int_to_ptr.vmem [resolvable:$true] %s193_s9 }
  0x10   : > { %p1668_p12 = scmp.ne.s32.totalorder %s2567_s2, %s1667_s12  ;;  %p1674_p5 = scmp.lt.u32.totalorder %s1667_s12, %s2567_s2 }
  0x11   : > { %p1923_p11 = pnand %p1476_p9, %p2572_p1 }
  0x13   : > { %p1669_p13 = pneg %p1923_p11 }
  0x15   : > { %p1670_p0 = pnand %p1669_p13, %p1668_p12 }
  0x17   : > { %p1671_p3 = pneg %p1670_p0 }
  0x19   : > { %p1676_p7 = pnand %p1674_p5, %p1671_p3 }
  0x1b   : > { %1679 = shalt.err (!%p1676_p7)
}
  0x1c   : > { %s1680_s17 = scalar_lea.vmem %s1916_s30, 4096  ;;  %p1688_p2 = scmp.lt.s32.totalorder %s1916_s30, %s1916_s30 }
  0x1d   : > { %p1681_p9 = scmp.ne.s32.totalorder %s1916_s30, %s1680_s17  ;;  %p1689_p12 = scmp.lt.s32.totalorder %s1680_s17, %s1680_s17 }
  0x1f   : > { %p1683_p10 = pnand %p1681_p9, %p1669_p13  ;;  %p1690_p0 = por %p1689_p12, %p1688_p2 }
  0x21   : > { %p1684_p1 = pneg %p1683_p10 }
  0x23   : > { %p1691_p6 = pnand %p1690_p0, %p1684_p1 }
  0x25   : > { %1694 = shalt.err (!%p1691_p6)
}
  0x26   : > { %s1827_s18 = smov 256   ;;  %s1828_s19 = smov 16  }
  0x27   : > { %1479 = dma.hbm_to_vmem [thread:$0]  (!%p1923_p11), %s2567_s2, 4096, %s1916_s30, [#allocation8], %s1827_s18, %s1827_s18, %s1828_s19  }
  0x28   : > { %s1695_s10 = scalar_lea.hbm %s2569_s4, 4096 }
  0x29   : > { %p1696_p2 = scmp.ne.s32.totalorder %s2569_s4, %s1695_s10  ;;  %p1702_p10 = scmp.lt.u32.totalorder %s1695_s10, %s2569_s4 }
  0x2b   : > { %p1698_p1 = pnand %p1696_p2, %p1669_p13 }
  0x2d   : > { %p1699_p6 = pneg %p1698_p1 }
  0x2f   : > { %p1704_p3 = pnand %p1702_p10, %p1699_p6 }
  0x31   : > { %1707 = shalt.err (!%p1704_p3)
}
  0x32   : > { %s1708_s30 = scalar_lea.vmem %s1927_s9, 4096  ;;  %p1716_p12 = scmp.lt.s32.totalorder %s1927_s9, %s1927_s9 }
  0x33   : > { %p1709_p5 = scmp.ne.s32.totalorder %s1927_s9, %s1708_s30  ;;  %p1717_p0 = scmp.lt.s32.totalorder %s1708_s30, %s1708_s30 }
  0x35   : > { %p1711_p7 = pnand %p1709_p5, %p1669_p13  ;;  %p1718_p2 = por %p1717_p0, %p1716_p12 }
  0x37   : > { %p1712_p9 = pneg %p1711_p7 }
  0x39   : > { %p1719_p1 = pnand %p1718_p2, %p1712_p9 }
  0x3b   : > { %1722 = shalt.err (!%p1719_p1)
}
  0x3c   : > { %s1829_s15 = smov 128   ;;  %s1830_s16 = smov 8  }
  0x3d   : > { %1482 = dma.hbm_to_vmem [thread:$0]  (!%p1923_p11), %s2569_s4, 4096, %s1927_s9, [#allocation8], %s1829_s15, %s1829_s15, %s1830_s16  }
  0x3e   : > { %s1985_s19 = sadd.s32 1, %s1823_s23   ;;  %s31_s25 = sadd.s32 1, %s1819_s22 }
  0x3f   : > { %s28_s20 = ssub.s32 %s1823_s23, %s1985_s19  ;;  %p38_p6 = scmp.ne.s32.totalorder %s1819_s22, %s1815_s21 }
  0x40   : > { %p29_p13 = scmp.eq.s32.totalorder %s28_s20, 0  ;;  %p39_p10 = scmp.eq.s32.totalorder %s1823_s23, 0 }
  0x41   : > { %p2579_p5 = scmp.eq.s32.totalorder %s1893_s24, 1  ;;  %p1493_p9 = scmp.lt.s32.totalorder %s1823_s23, 2 }
  0x42   : > { %s1994_s29 = scalar_select %p29_p13, %s1819_s22, %s31_s25  }
  0x43   : > { %p40_p3 = por %p39_p10, %p38_p6  ;;  %p1998_p7 = por %p2579_p5, %p38_p6 }
  0x44   : > { %s210_s8 = sand.u32 1, %s1819_s22   ;;  %s1350_s9 = sshll.u32 %s1823_s23, 12 }
  0x45   : > { %s2580_s7 = scalar_select %p1998_p7, 1, 0 }
  0x46   : > { %s1336_s10 = sshll.u32 %s210_s8, 8  ;;  %s2008_s13 = scalar_lea.hbm %s2566_s1, %s1350_s9 }
  0x47   : > { %s214_s14 = scalar_lea.vmem [#allocation4], %s1336_s10  ;;  %p2012_p11 = pnand %p1493_p9, %p40_p3 }
  0x48   : > { %s221_s30 = sshll.u32 %s214_s14, 4  ;;  %s2016_s18 = scalar_lea.sflag [#allocation5], %s210_s8  ;;  %s2010_s30 = int_to_ptr.vmem [resolvable:$true] %s221_s30 }
  0x49   : > { %s1723_s20 = scalar_lea.hbm %s2008_s13, 4096  ;;  %p1725_p0 = pneg %p2012_p11 }
  0x4a   : > { %p1724_p12 = scmp.ne.s32.totalorder %s2008_s13, %s1723_s20  ;;  %s1728_s9 = scalar_lea.hbm %s2566_s1, 8192 }
  0x4b   : > { %p1729_p13 = scmp.lt.u32.totalorder %s2008_s13, %s2566_s1  ;;  %p1730_p6 = scmp.lt.u32.totalorder %s1728_s9, %s1723_s20 }
  0x4c   : > { %p1726_p2 = pnand %p1725_p0, %p1724_p12  ;;  %p1732_p3 = scmp.lt.u32.totalorder %s1723_s20, %s2008_s13 }
  0x4d   : > { %p1731_p10 = por %p1730_p6, %p1729_p13 }
  0x4e   : > { %p1727_p1 = pneg %p1726_p2 }
  0x4f   : > { %p1733_p5 = por %p1732_p3, %p1731_p10 }
  0x51   : > { %p1734_p9 = pnand %p1733_p5, %p1727_p1 }
  0x53   : > { %1737 = shalt.err (!%p1734_p9)
}
  0x54   : > { %s1738_s8 = scalar_lea.vmem %s2010_s30, 4096  ;;  %s1831_s14 = smov [#allocation4]  }
  0x55   : > { %p1739_p12 = scmp.ne.s32.totalorder %s2010_s30, %s1738_s8  ;;  %s1743_s25 = sshll.u32 %s1831_s14, 4  ;;  %s1744_s25 = int_to_ptr.vmem [resolvable:$false] %s1743_s25 }
  0x56   : > { %s1745_s10 = scalar_lea.vmem %s1744_s25, 8192  ;;  %p1746_p4 = scmp.lt.s32.totalorder %s2010_s30, %s1744_s25 }
  0x57   : > { %p1741_p2 = pnand %p1739_p12, %p1725_p0  ;;  %p1747_p13 = scmp.lt.s32.totalorder %s1745_s10, %s1738_s8 }
  0x59   : > { %p1742_p7 = pneg %p1741_p2  ;;  %p1748_p6 = por %p1747_p13, %p1746_p4 }
  0x5b   : > { %p1749_p10 = pnand %p1748_p6, %p1742_p7 }
  0x5d   : > { %1752 = shalt.err (!%p1749_p10)
}
  0x5e   : > { %1486 = dma.hbm_to_vmem [thread:$0]  (!%p2012_p11), %s2008_s13, 4096, %s2010_s30, %s2016_s18, %s1829_s15, %s1829_s15, %s1830_s16  }
  0x5f   : > { %233 = sbr.rel (%p1912_p8) target bundleno = 727 (0x2d7), region = 40  ;;  %s2050_s20 = sand.u32 (!%p1912_p8), 1, %s1815_s21  }
  0x60   : > { %s1340_s9 = sshll.u32 (!%p1912_p8), %s2050_s20, 8  ;;  %s236_s11 = scalar_lea.sflag (!%p1912_p8), [#allocation5], %s2050_s20 }
  0x61   : > { %s2056_s17 = scalar_lea.vmem (!%p1912_p8), [#allocation4], %s1340_s9  ;;  %p2582_p4 = scmp.ne.s32.totalorder (!%p1912_p8), %s2575_s26, 0 }
  0x66   : > { %1798 = dma.done.wait (%p2582_p4), %s236_s11, 4096  }
  0x67   : > { %1800 = vsyncadd (%p2582_p4), %s236_s11, 4294963200  ;;  %p2583_p7 = scmp.eq.s32.totalorder %s1893_s24, 0 }
  0x69   : > { %1802 = dma.done.wait (%p2583_p7), [#allocation8], 8192   ;;  %p2584_p8 = pmov %p2583_p7 }
  0x6a   : > { %v1832_v0 = vmov 0.0   ;;  %v309_v1 = vld [vmem:[#allocation7 + $0x8] sm:$0xff]  ;;  %v311_v2 = vld [vmem:[#allocation7 + $0x18] sm:$0xff]  ;;  %v308_v3 = vld [vmem:[#allocation7] sm:$0xff]  ;;  %v1833_v53 = vmov 0.0|0.0   ;;  %s2449_s13 = scalar_lea.vmem [#allocation10], %s1340_s9 }
  0x6b   : > { %1804 = vsyncadd (%p2584_p8), [#allocation8], 4294959104  ;;  %416 = vmatprep.mubr.f32.mxu0 %v1832_v0  ;;  %v1352_v4 = vpack.c.bf16 %v311_v2, %v309_v1  ;;  %v310_v5 = vld [vmem:[#allocation7 + $0x10] sm:$0xff]  ;;  %v313_v6 = vld [vmem:[#allocation7 + $0x28] sm:$0xff]  ;;  %1432 = vmatprep.subr.bf16.mxu1 %v1833_v53  ;;  %s1351_s30 = sshll.u32 %s1893_s24, 12  ;;  %s1239_s18 = sshll.u32 %s2449_s13, 4  ;;  %s2519_s18 = int_to_ptr.vmem [resolvable:$true] %s1239_s18 }
  0x6c   : > { %v315_v7 = vld [vmem:[#allocation7 + $0x38] sm:$0xff]  ;;  %v1354_v8 = vpack.c.bf16 %v310_v5, %v308_v3  ;;  %v312_v10 = vld [vmem:[#allocation7 + $0x20] sm:$0xff]  ;;  %v314_v11 = vld [vmem:[#allocation7 + $0x30] sm:$0xff]  ;;  %s2517_s14 = scalar_lea.hbm %s2571_s6, %s1351_s30  ;;  %s1226_s25 = scalar_lea.sflag [#allocation6], %s2050_s20 }
  0x6d   : > { %v1356_v9 = vpack.c.bf16 %v315_v7, %v313_v6  ;;  %v317_v12 = vld [vmem:[#allocation7 + $0x48] sm:$0xff]  ;;  %1353 = vmatprep.subr.bf16.mxu0 %v1352_v4  ;;  %v319_v13 = vld [vmem:[#allocation7 + $0x58] sm:$0xff]  ;;  %v1358_v14 = vpack.c.bf16 %v314_v11, %v312_v10  ;;  %v316_v16 = vld [vmem:[#allocation7 + $0x40] sm:$0xff]  ;;  %s1753_s10 = scalar_lea.vmem %s2519_s18, 4096  ;;  %p2585_p0 = scmp.ne.s32.totalorder %s2580_s7, 0 }
  0x6e   : > { %1355 = vmatpush1.bf16.msra.mxu0 %v1354_v8  ;;  %v1360_v15 = vpack.c.bf16 %v319_v13, %v317_v12  ;;  %v318_v17 = vld [vmem:[#allocation7 + $0x50] sm:$0xff]  ;;  %v321_v18 = vld [vmem:[#allocation7 + $0x68] sm:$0xff]  ;;  %v323_v19 = vld [vmem:[#allocation7 + $0x78] sm:$0xff]  ;;  %p1754_p11 = scmp.ne.s32.totalorder %s2519_s18, %s1753_s10  ;;  %s1834_s24 = smov [#allocation10]  }
  0x6f   : > { %1357 = vmatprep.subr.bf16.mxu0 %v1356_v9  ;;  %v1362_v20 = vpack.c.bf16 %v318_v17, %v316_v16  ;;  %v1364_v21 = vpack.c.bf16 %v323_v19, %v321_v18  ;;  %v320_v22 = vld [vmem:[#allocation7 + $0x60] sm:$0xff]  ;;  %v322_v23 = vld [vmem:[#allocation7 + $0x70] sm:$0xff]  ;;  %v325_v24 = vld [vmem:[#allocation7 + $0x88] sm:$0xff]  ;;  %s1757_s9 = sshll.u32 %s1834_s24, 4  ;;  %s1758_s9 = int_to_ptr.vmem [resolvable:$false] %s1757_s9 }
  0x70   : > { %v327_v25 = vld [vmem:[#allocation7 + $0x98] sm:$0xff]  ;;  %v1366_v26 = vpack.c.bf16 %v322_v23, %v320_v22  ;;  %v324_v28 = vld [vmem:[#allocation7 + $0x80] sm:$0xff]  ;;  %v326_v29 = vld [vmem:[#allocation7 + $0x90] sm:$0xff]  ;;  %p1755_p1 = pnand %p1754_p11, %p2585_p0  ;;  %s1759_s11 = scalar_lea.vmem %s1758_s9, 8192 }
  0x71   : > { %v1368_v27 = vpack.c.bf16 %v327_v25, %v325_v24  ;;  %v329_v30 = vld [vmem:[#allocation7 + $0xa8] sm:$0xff]  ;;  %v331_v31 = vld [vmem:[#allocation7 + $0xb8] sm:$0xff]  ;;  %v1370_v32 = vpack.c.bf16 %v326_v29, %v324_v28  ;;  %v328_v34 = vld [vmem:[#allocation7 + $0xa0] sm:$0xff]  ;;  %p1760_p5 = scmp.lt.s32.totalorder %s2519_s18, %s1758_s9  ;;  %p1761_p9 = scmp.lt.s32.totalorder %s1759_s11, %s1753_s10 }
  0x72   : > { %1359 = vmatpush1.bf16.msra.mxu0 %v1358_v14  ;;  %v1372_v33 = vpack.c.bf16 %v331_v31, %v329_v30  ;;  %v330_v35 = vld [vmem:[#allocation7 + $0xb0] sm:$0xff]  ;;  %v333_v36 = vld [vmem:[#allocation7 + $0xc8] sm:$0xff]  ;;  %v335_v37 = vld [vmem:[#allocation7 + $0xd8] sm:$0xff]  ;;  %p1756_p3 = pneg %p1755_p1 }
  0x73   : > { %1361 = vmatprep.subr.bf16.mxu0 %v1360_v15  ;;  %v1374_v38 = vpack.c.bf16 %v330_v35, %v328_v34  ;;  %v1376_v39 = vpack.c.bf16 %v335_v37, %v333_v36  ;;  %v332_v40 = vld [vmem:[#allocation7 + $0xc0] sm:$0xff]  ;;  %v334_v41 = vld [vmem:[#allocation7 + $0xd0] sm:$0xff]  ;;  %v337_v42 = vld [vmem:[#allocation7 + $0xe8] sm:$0xff]  ;;  %p1762_p12 = por %p1761_p9, %p1760_p5 }
  0x74   : > { %v339_v43 = vld [vmem:[#allocation7 + $0xf8] sm:$0xff]  ;;  %v1378_v44 = vpack.c.bf16 %v334_v41, %v332_v40  ;;  %v336_v46 = vld [vmem:[#allocation7 + $0xe0] sm:$0xff]  ;;  %v338_v47 = vld [vmem:[#allocation7 + $0xf0] sm:$0xff] }
  0x75   : > { %v1380_v45 = vpack.c.bf16 %v339_v43, %v337_v42  ;;  %v1382_v48 = vpack.c.bf16 %v338_v47, %v336_v46  ;;  %v929_v49 = vld [vmem:[#allocation9] sm:$0xff]  ;;  %v930_v50 = vld [vmem:[#allocation9 + $0x8] sm:$0xff]  ;;  %v931_v54 = vld [vmem:[#allocation9 + $0x10] sm:$0xff]  ;;  %p1763_p2 = pnand %p1762_p12, %p1756_p3 }
  0x76   : > { %1363 = vmatpush1.bf16.msra.mxu0 %v1362_v20  ;;  %v276_v51 = vld [vmem:[%s2056_s17] sm:$0xff]  ;;  %v1385_v52 = vpack.c.bf16 %v930_v50, %v929_v49  ;;  %v932_v55 = vld [vmem:[#allocation9 + $0x18] sm:$0xff]  ;;  %v277_v56 = vld [vmem:[%s2056_s17 + $0x8] sm:$0xff] }
  0x77   : > { %1365 = vmatprep.subr.bf16.mxu0 %v1364_v21  ;;  %v1388_v57 = vpack.c.bf16 %v932_v55, %v931_v54  ;;  %v933_v58 = vld [vmem:[#allocation9 + $0x20] sm:$0xff]  ;;  %v934_v59 = vld [vmem:[#allocation9 + $0x28] sm:$0xff]  ;;  %v278_v60 = vld [vmem:[%s2056_s17 + $0x10] sm:$0xff] }
  0x78   : > { %1448 = vmatpush1.bf16.msra.mxu1 %v1385_v52  ;;  %v1391_v61 = vpack.c.bf16 %v934_v59, %v933_v58  ;;  %v935_v62 = vld [vmem:[#allocation9 + $0x30] sm:$0xff]  ;;  %v936_v63 = vld [vmem:[#allocation9 + $0x38] sm:$0xff]  ;;  %v937_v3 = vld [vmem:[#allocation9 + $0x40] sm:$0xff] }
  0x79   : > { %1433 = vmatprep.subr.bf16.mxu1 %v1833_v53  ;;  %v279_v1 = vld [vmem:[%s2056_s17 + $0x18] sm:$0xff]  ;;  %v1394_v2 = vpack.c.bf16 %v936_v63, %v935_v62  ;;  %v938_v4 = vld [vmem:[#allocation9 + $0x48] sm:$0xff]  ;;  %v280_v5 = vld [vmem:[%s2056_s17 + $0x20] sm:$0xff] }
  0x7a   : > { %1367 = vmatpush1.bf16.msra.mxu0 %v1366_v26  ;;  %v1397_v6 = vpack.c.bf16 %v938_v4, %v937_v3  ;;  %v939_v7 = vld [vmem:[#allocation9 + $0x50] sm:$0xff]  ;;  %v940_v8 = vld [vmem:[#allocation9 + $0x58] sm:$0xff]  ;;  %v281_v9 = vld [vmem:[%s2056_s17 + $0x28] sm:$0xff]  ;;  %v342_v4 = vlaneseq }
  0x7b   : > { %1369 = vmatprep.subr.bf16.mxu0 %v1368_v27  ;;  %v1400_v10 = vpack.c.bf16 %v940_v8, %v939_v7  ;;  %v941_v11 = vld [vmem:[#allocation9 + $0x60] sm:$0xff]  ;;  %v942_v12 = vld [vmem:[#allocation9 + $0x68] sm:$0xff]  ;;  %v282_v13 = vld [vmem:[%s2056_s17 + $0x30] sm:$0xff] }
  0x7c   : > { %1449 = vmatpush1.bf16.msra.mxu1 %v1388_v57  ;;  %v1403_v14 = vpack.c.bf16 %v942_v12, %v941_v11  ;;  %v943_v15 = vld [vmem:[#allocation9 + $0x70] sm:$0xff]  ;;  %v944_v16 = vld [vmem:[#allocation9 + $0x78] sm:$0xff]  ;;  %v945_v19 = vld [vmem:[#allocation9 + $0x80] sm:$0xff] }
  0x7d   : > { %1434 = vmatprep.subr.bf16.mxu1 %v1833_v53  ;;  %v283_v17 = vld [vmem:[%s2056_s17 + $0x38] sm:$0xff]  ;;  %v1406_v18 = vpack.c.bf16 %v944_v16, %v943_v15  ;;  %v946_v20 = vld [vmem:[#allocation9 + $0x88] sm:$0xff]  ;;  %v284_v21 = vld [vmem:[%s2056_s17 + $0x40] sm:$0xff] }
  0x7e   : > { %1371 = vmatpush1.bf16.msra.mxu0 %v1370_v32  ;;  %v1409_v22 = vpack.c.bf16 %v946_v20, %v945_v19  ;;  %v947_v23 = vld [vmem:[#allocation9 + $0x90] sm:$0xff]  ;;  %v948_v24 = vld [vmem:[#allocation9 + $0x98] sm:$0xff]  ;;  %v285_v25 = vld [vmem:[%s2056_s17 + $0x48] sm:$0xff] }
  0x7f   : > { %1373 = vmatprep.subr.bf16.mxu0 %v1372_v33  ;;  %v1412_v26 = vpack.c.bf16 %v948_v24, %v947_v23  ;;  %v949_v27 = vld [vmem:[#allocation9 + $0xa0] sm:$0xff]  ;;  %v950_v28 = vld [vmem:[#allocation9 + $0xa8] sm:$0xff]  ;;  %v286_v29 = vld [vmem:[%s2056_s17 + $0x50] sm:$0xff] }
  0x80   : > { %1450 = vmatpush1.bf16.msra.mxu1 %v1391_v61  ;;  %v1415_v30 = vpack.c.bf16 %v950_v28, %v949_v27  ;;  %v287_v31 = vld [vmem:[%s2056_s17 + $0x58] sm:$0xff]  ;;  %v288_v32 = vld [vmem:[%s2056_s17 + $0x60] sm:$0xff]  ;;  %v289_v33 = vld [vmem:[%s2056_s17 + $0x68] sm:$0xff] }
  0x81   : > { %1435 = vmatprep.subr.bf16.mxu1 %v1833_v53  ;;  %v290_v34 = vld [vmem:[%s2056_s17 + $0x70] sm:$0xff]  ;;  %v291_v35 = vld [vmem:[%s2056_s17 + $0x78] sm:$0xff]  ;;  %v292_v36 = vld [vmem:[%s2056_s17 + $0x80] sm:$0xff] }
  0x82   : > { %1375 = vmatpush1.bf16.msra.mxu0 %v1374_v38  ;;  %v293_v37 = vld [vmem:[%s2056_s17 + $0x88] sm:$0xff]  ;;  %v294_v38 = vld [vmem:[%s2056_s17 + $0x90] sm:$0xff]  ;;  %v296_v40 = vld [vmem:[%s2056_s17 + $0xa0] sm:$0xff] }
  0x83   : > { %1377 = vmatprep.subr.bf16.mxu0 %v1376_v39  ;;  %v295_v39 = vld [vmem:[%s2056_s17 + $0x98] sm:$0xff]  ;;  %v297_v41 = vld [vmem:[%s2056_s17 + $0xa8] sm:$0xff]  ;;  %v951_v42 = vld [vmem:[#allocation9 + $0xb0] sm:$0xff] }
  0x84   : > { %1451 = vmatpush1.bf16.msra.mxu1 %v1394_v2  ;;  %v952_v43 = vld [vmem:[#allocation9 + $0xb8] sm:$0xff]  ;;  %v953_v46 = vld [vmem:[#allocation9 + $0xc0] sm:$0xff]  ;;  %v954_v47 = vld [vmem:[#allocation9 + $0xc8] sm:$0xff] }
  0x85   : > { %1436 = vmatprep.subr.bf16.mxu1 %v1833_v53  ;;  %v299_v49 = vld [vmem:[%s2056_s17 + $0xb8] sm:$0xff]  ;;  %v955_v50 = vld [vmem:[#allocation9 + $0xd0] sm:$0xff]  ;;  %v300_v54 = vld [vmem:[%s2056_s17 + $0xc0] sm:$0xff] }
  0x86   : > { %1379 = vmatpush1.bf16.msra.mxu0 %v1378_v44  ;;  %v1418_v44 = vpack.c.bf16 %v952_v43, %v951_v42  ;;  %v957_v55 = vld [vmem:[#allocation9 + $0xe0] sm:$0xff]  ;;  %v301_v58 = vld [vmem:[%s2056_s17 + $0xc8] sm:$0xff]  ;;  %v959_v59 = vld [vmem:[#allocation9 + $0xf0] sm:$0xff] }
  0x87   : > { %1381 = vmatprep.subr.bf16.mxu0 %v1380_v45  ;;  %v298_v45 = vld [vmem:[%s2056_s17 + $0xb0] sm:$0xff]  ;;  %v303_v63 = vld [vmem:[%s2056_s17 + $0xd8] sm:$0xff]  ;;  %v340_v7 = vld [vmem:[%s2568_s3] sm:$0x3] }
  0x88   : > { %1452 = vmatpush1.bf16.msra.mxu1 %v1397_v6  ;;  %v302_v62 = vld [vmem:[%s2056_s17 + $0xd0] sm:$0xff]  ;;  %v307_v3 = vld [vmem:[%s2056_s17 + $0xf8] sm:$0xff] }
  0x89   : > { %1437 = vmatprep.subr.bf16.mxu1 %v1833_v53 }
  0x8a   : > { %1383 = vmatpush1.bf16.msra.mxu0 %v1382_v48  ;;  %v1421_v48 = vpack.c.bf16 %v954_v47, %v953_v46 }
  0x8b   : > { %1384 = vmatprep.subr.bf16.mxu0 %v1833_v53 }
  0x8c   : > { %1453 = vmatpush1.bf16.msra.mxu1 %v1400_v10 }
  0x8d   : > { %417 = vmatmul.mubr.f32.vlgmr.msra.gmra.mrb[0].mxu0 %v276_v51  ;;  %1438 = vmatprep.subr.bf16.mxu1 %v1833_v53  ;;  %v956_v51 = vld [vmem:[#allocation9 + $0xd8] sm:$0xff] }
  0x8e   : > { %422 = vmatprep.mubr.f32.mxu0 %v1832_v0  ;;  %1386 = vmatpush1.bf16.msra.mxu0 %v1385_v52  ;;  %v1424_v52 = vpack.c.bf16 %v956_v51, %v955_v50 }
  0x8f   : > { %1387 = vmatprep.subr.bf16.mxu0 %v1833_v53 }
  0x90   : > { %1454 = vmatpush1.bf16.msra.mxu1 %v1403_v14 }
  0x91   : > { %423 = vmatmul.mubr.f32.gmra.mrb[2].mxu0 %v277_v56  ;;  %1439 = vmatprep.subr.bf16.mxu1 %v1833_v53  ;;  %v958_v56 = vld [vmem:[#allocation9 + $0xe8] sm:$0xff] }
  0x92   : > { %428 = vmatprep.mubr.f32.mxu0 %v1832_v0  ;;  %1389 = vmatpush1.bf16.msra.mxu0 %v1388_v57  ;;  %v1427_v57 = vpack.c.bf16 %v958_v56, %v957_v55 }
  0x93   : > { %1390 = vmatprep.subr.bf16.mxu0 %v1833_v53 }
  0x94   : > { %1455 = vmatpush1.bf16.msra.mxu1 %v1406_v18 }
  0x95   : > { %429 = vmatmul.mubr.f32.gmra.mrb[4].mxu0 %v278_v60  ;;  %1440 = vmatprep.subr.bf16.mxu1 %v1833_v53  ;;  %v960_v60 = vld [vmem:[#allocation9 + $0xf8] sm:$0xff] }
  0x96   : > { %434 = vmatprep.mubr.f32.mxu0 %v1832_v0  ;;  %1392 = vmatpush1.bf16.msra.mxu0 %v1391_v61  ;;  %v1430_v61 = vpack.c.bf16 %v960_v60, %v959_v59 }
  0x97   : > { %1393 = vmatprep.subr.bf16.mxu0 %v1833_v53 }
  0x98   : > { %1456 = vmatpush1.bf16.msra.mxu1 %v1409_v22 }
  0x99   : > { %435 = vmatmul.mubr.f32.gmra.mrb[6].mxu0 %v279_v1  ;;  %1441 = vmatprep.subr.bf16.mxu1 %v1833_v53  ;;  %v304_v1 = vld [vmem:[%s2056_s17 + $0xe0] sm:$0xff] }
  0x9a   : > { %440 = vmatprep.mubr.f32.mxu0 %v1832_v0  ;;  %1395 = vmatpush1.bf16.msra.mxu0 %v1394_v2  ;;  %v306_v2 = vld [vmem:[%s2056_s17 + $0xf0] sm:$0xff] }
  0x9b   : > { %1396 = vmatprep.subr.bf16.mxu0 %v1833_v53 }
  0x9c   : > { %1457 = vmatpush1.bf16.msra.mxu1 %v1412_v26 }
  0x9d   : > { %441 = vmatmul.mubr.f32.gmra.mrb[8].mxu0 %v280_v5  ;;  %1442 = vmatprep.subr.bf16.mxu1 %v1833_v53  ;;  %v343_v5 = vshrl.u32 %v342_v4, 7 }
  0x9e   : > { %446 = vmatprep.mubr.f32.mxu0 %v1832_v0  ;;  %1398 = vmatpush1.bf16.msra.mxu0 %v1397_v6 }
  0x9f   : > { %1399 = vmatprep.subr.bf16.mxu0 %v1833_v53  ;;  %v344_v6 = vsub.s32 0, %v343_v5  ;;  %v348_v8 = vsub.s32 1, %v343_v5 }
  0xa0   : > { %1458 = vmatpush1.bf16.msra.mxu1 %v1415_v30 }
  0xa1   : > { %447 = vmatmul.mubr.f32.gmra.mrb[10].mxu0 %v281_v9  ;;  %1443 = vmatprep.subr.bf16.mxu1 %v1833_v53  ;;  %v2165_v9 = vrot.slane %v340_v7, %v344_v6 }
  0xa2   : > { %452 = vmatprep.mubr.f32.mxu0 %v1832_v0  ;;  %1401 = vmatpush1.bf16.msra.mxu0 %v1400_v10  ;;  %v2167_v10 = vrot.slane %v340_v7, %v348_v8 }
  0xa3   : > { %1402 = vmatprep.subr.bf16.mxu0 %v1833_v53 }
  0xa4   : > { %1459 = vmatpush1.bf16.msra.mxu1 %v1418_v44 }
  0xa5   : > { %453 = vmatmul.mubr.f32.gmra.mrb[12].mxu0 %v282_v13  ;;  %1444 = vmatprep.subr.bf16.mxu1 %v1833_v53 }
  0xa6   : > { %458 = vmatprep.mubr.f32.mxu0 %v1832_v0  ;;  %1404 = vmatpush1.bf16.msra.mxu0 %v1403_v14 }
  0xa7   : > { %1405 = vmatprep.subr.bf16.mxu0 %v1833_v53 }
  0xa8   : > { %1460 = vmatpush1.bf16.msra.mxu1 %v1421_v48 }
  0xa9   : > { %459 = vmatmul.mubr.f32.gmra.mrb[14].mxu0 %v283_v17  ;;  %1445 = vmatprep.subr.bf16.mxu1 %v1833_v53 }
  0xaa   : > { %464 = vmatprep.mubr.f32.mxu0 %v1832_v0  ;;  %1407 = vmatpush1.bf16.msra.mxu0 %v1406_v18 }
  0xab   : > { %1408 = vmatprep.subr.bf16.mxu0 %v1833_v53 }
  0xac   : > { %1461 = vmatpush1.bf16.msra.mxu1 %v1424_v52 }
  0xad   : > { %465 = vmatmul.mubr.f32.gmra.mrb[16].mxu0 %v284_v21  ;;  %1446 = vmatprep.subr.bf16.mxu1 %v1833_v53 }
  0xae   : > { %470 = vmatprep.mubr.f32.mxu0 %v1832_v0  ;;  %1410 = vmatpush1.bf16.msra.mxu0 %v1409_v22 }
  0xaf   : > { %1411 = vmatprep.subr.bf16.mxu0 %v1833_v53 }
  0xb0   : > { %1462 = vmatpush1.bf16.msra.mxu1 %v1427_v57 }
  0xb1   : > { %471 = vmatmul.mubr.f32.gmra.mrb[18].mxu0 %v285_v25  ;;  %1447 = vmatprep.subr.bf16.mxu1 %v1833_v53 }
  0xb2   : > { %476 = vmatprep.mubr.f32.mxu0 %v1832_v0  ;;  %1413 = vmatpush1.bf16.msra.mxu0 %v1412_v26 }
  0xb3   : > { %1414 = vmatprep.subr.bf16.mxu0 %v1833_v53 }
  0xb4   : > { %1463 = vmatpush1.bf16.msra.mxu1 %v1430_v61 }
  0xb5   : > { %477 = vmatmul.mubr.f32.gmra.mrb[20].mxu0 %v286_v29 }
  0xb6   : > { %482 = vmatprep.mubr.f32.mxu0 %v1832_v0  ;;  %1416 = vmatpush1.bf16.msra.mxu0 %v1415_v30 }
  0xb7   : > { %1417 = vmatprep.subr.bf16.mxu0 %v1833_v53 }
  0xb9   : > { %483 = vmatmul.mubr.f32.gmra.mrb[22].mxu0 %v287_v31 }
  0xba   : > { %488 = vmatprep.mubr.f32.mxu0 %v1832_v0  ;;  %1419 = vmatpush1.bf16.msra.mxu0 %v1418_v44 }
  0xbb   : > { %1420 = vmatprep.subr.bf16.mxu0 %v1833_v53 }
  0xbd   : > { %489 = vmatmul.mubr.f32.gmra.mrb[24].mxu0 %v288_v32 }
  0xbe   : > { %494 = vmatprep.mubr.f32.mxu0 %v1832_v0  ;;  %1422 = vmatpush1.bf16.msra.mxu0 %v1421_v48 }
  0xbf   : > { %1423 = vmatprep.subr.bf16.mxu0 %v1833_v53 }
  0xc1   : > { %495 = vmatmul.mubr.f32.gmra.mrb[26].mxu0 %v289_v33 }
  0xc2   : > { %500 = vmatprep.mubr.f32.mxu0 %v1832_v0  ;;  %1425 = vmatpush1.bf16.msra.mxu0 %v1424_v52 }
  0xc3   : > { %1426 = vmatprep.subr.bf16.mxu0 %v1833_v53 }
  0xc5   : > { %501 = vmatmul.mubr.f32.gmra.mrb[28].mxu0 %v290_v34 }
  0xc6   : > { %506 = vmatprep.mubr.f32.mxu0 %v1832_v0  ;;  %1428 = vmatpush1.bf16.msra.mxu0 %v1427_v57 }
  0xc7   : > { %1429 = vmatprep.subr.bf16.mxu0 %v1833_v53  ;;  %v305_v53 = vld [vmem:[%s2056_s17 + $0xe8] sm:$0xff] }
  0xc9   : > { %507 = vmatmul.mubr.f32.gmra.mrb[30].mxu0 %v291_v35 }
  0xca   : > { %512 = vmatprep.mubr.f32.mxu0 %v1832_v0  ;;  %1431 = vmatpush1.bf16.msra.mxu0 %v1430_v61 }
  0xcd   : > { %513 = vmatmul.mubr.f32.gmra.mrb[32].mxu0 %v292_v36 }
  0xce   : > { %518 = vmatprep.mubr.f32.mxu0 %v1832_v0 }
  0xd1   : > { %519 = vmatmul.mubr.f32.gmra.mrb[34].mxu0 %v293_v37 }
  0xd2   : > { %524 = vmatprep.mubr.f32.mxu0 %v1832_v0 }
  0xd5   : > { %525 = vmatmul.mubr.f32.gmra.mrb[36].mxu0 %v294_v38 }
  0xd6   : > { %530 = vmatprep.mubr.f32.mxu0 %v1832_v0 }
  0xd9   : > { %531 = vmatmul.mubr.f32.gmra.mrb[38].mxu0 %v295_v39 }
  0xda   : > { %536 = vmatprep.mubr.f32.mxu0 %v1832_v0 }
  0xdd   : > { %537 = vmatmul.mubr.f32.gmra.mrb[40].mxu0 %v296_v40 }
  0xde   : > { %542 = vmatprep.mubr.f32.mxu0 %v1832_v0 }
  0xe1   : > { %543 = vmatmul.mubr.f32.gmra.mrb[42].mxu0 %v297_v41 }
  0xe2   : > { %548 = vmatprep.mubr.f32.mxu0 %v1832_v0 }
  0xe5   : > { %549 = vmatmul.mubr.f32.gmra.mrb[44].mxu0 %v298_v45 }
  0xe6   : > { %554 = vmatprep.mubr.f32.mxu0 %v1832_v0 }
  0xe9   : > { %555 = vmatmul.mubr.f32.gmra.mrb[46].mxu0 %v299_v49 }
  0xea   : > { %560 = vmatprep.mubr.f32.mxu0 %v1832_v0 }
  0xed   : > { %561 = vmatmul.mubr.f32.gmra.mrb[48].mxu0 %v300_v54 }
  0xee   : > { %566 = vmatprep.mubr.f32.mxu0 %v1832_v0 }
  0xf1   : > { %567 = vmatmul.mubr.f32.gmra.mrb[50].mxu0 %v301_v58 }
  0xf2   : > { %572 = vmatprep.mubr.f32.mxu0 %v1832_v0 }
  0xf5   : > { %573 = vmatmul.mubr.f32.gmra.mrb[52].mxu0 %v302_v62 }
  0xf6   : > { %578 = vmatprep.mubr.f32.mxu0 %v1832_v0 }
  0xf9   : > { %579 = vmatmul.mubr.f32.gmra.mrb[54].mxu0 %v303_v63 }
  0xfa   : > { %584 = vmatprep.mubr.f32.mxu0 %v1832_v0 }
  0xfd   : > { %585 = vmatmul.mubr.f32.gmra.mrb[56].mxu0 %v304_v1 }
  0xfe   : > { %590 = vmatprep.mubr.f32.mxu0 %v1832_v0 }
 0x101   : > { %591 = vmatmul.mubr.f32.gmra.mrb[58].mxu0 %v305_v53 }
 0x102   : > { %596 = vmatprep.mubr.f32.mxu0 %v1832_v0 }
 0x105   : > { %597 = vmatmul.mubr.f32.gmra.mrb[60].mxu0 %v306_v2 }
 0x106   : > { %602 = vmatprep.mubr.f32.mxu0 %v1832_v0 }
 0x109   : > { %603 = vmatmul.mubr.f32.gmra.mrb[62].mxu0 %v307_v3 }
 0x160   : > { %v418_v11 = vpop.f32.mrb[0].mxu0 }
 0x161   : > { %v419_v12 = vadd.f32 %v418_v11, %v2165_v9  ;;  %v420_v13 = vpop.f32.mrb[1].mxu0 }
 0x162   : > { %v421_v0 = vadd.f32 %v420_v13, %v2167_v10 }
 0x163   : > { %v673_v14 = vmul.f32 0.70710677, %v419_v12  ;;  %v609_v42 = vmul.f32 0.5, %v419_v12 }
 0x164   : > { %v674_v15 = vmul.f32 0.70710677, %v421_v0  ;;  %v424_v16 = vpop.f32.mrb[2].mxu0  ;;  %v610_v38 = vmul.f32 0.5, %v421_v0 }
 0x165   : > { %1539 = verf.f32 %v673_v14  ;;  %v425_v17 = vadd.f32 %v424_v16, %v2165_v9  ;;  %v426_v18 = vpop.f32.mrb[3].mxu0 }
 0x166   : > { %1541 = verf.f32 %v674_v15  ;;  %v427_v19 = vadd.f32 %v426_v18, %v2167_v10 }
 0x167   : > { %v675_v20 = vmul.f32 0.70710677, %v425_v17  ;;  %v611_v57 = vmul.f32 0.5, %v425_v17 }
 0x168   : > { %v676_v21 = vmul.f32 0.70710677, %v427_v19  ;;  %v430_v22 = vpop.f32.mrb[4].mxu0  ;;  %v612_v52 = vmul.f32 0.5, %v427_v19 }
 0x169   : > { %1543 = verf.f32 %v675_v20  ;;  %v431_v23 = vadd.f32 %v430_v22, %v2165_v9  ;;  %v432_v24 = vpop.f32.mrb[5].mxu0 }
 0x16a   : > { %1545 = verf.f32 %v676_v21  ;;  %v433_v25 = vadd.f32 %v432_v24, %v2167_v10 }
 0x16b   : > { %v677_v26 = vmul.f32 0.70710677, %v431_v23  ;;  %v613_v7 = vmul.f32 0.5, %v431_v23 }
 0x16c   : > { %v678_v27 = vmul.f32 0.70710677, %v433_v25  ;;  %v436_v28 = vpop.f32.mrb[6].mxu0  ;;  %v614_v3 = vmul.f32 0.5, %v433_v25 }
 0x16d   : > { %1547 = verf.f32 %v677_v26  ;;  %v2176_v29 = vadd.f32 %v436_v28, %v2165_v9  ;;  %v438_v30 = vpop.f32.mrb[7].mxu0 }
 0x16e   : > { %1549 = verf.f32 %v678_v27  ;;  %v439_v31 = vadd.f32 %v438_v30, %v2167_v10 }
 0x16f   : > { %v1540_v32 = vpop.eup %1539  ;;  %v679_v33 = vmul.f32 0.70710677, %v2176_v29  ;;  %v615_v22 = vmul.f32 0.5, %v2176_v29 }
 0x170   : > { %v1542_v34 = vpop.eup %1541  ;;  %v801_v35 = vadd.f32 1.0, %v1540_v32  ;;  %v680_v36 = vmul.f32 0.70710677, %v439_v31  ;;  %v442_v37 = vpop.f32.mrb[8].mxu0  ;;  %v616_v18 = vmul.f32 0.5, %v439_v31 }
 0x171   : > { %v802_v39 = vadd.f32 1.0, %v1542_v34  ;;  %1551 = verf.f32 %v679_v33  ;;  %v2181_v40 = vadd.f32 %v442_v37, %v2165_v9  ;;  %v444_v41 = vpop.f32.mrb[9].mxu0 }
 0x172   : > { %1553 = verf.f32 %v680_v36  ;;  %v2184_v43 = vadd.f32 %v444_v41, %v2167_v10  ;;  %v865_v48 = vmul.f32 %v801_v35, %v609_v42 }
 0x173   : > { %v1544_v44 = vpop.eup %1543  ;;  %v681_v45 = vmul.f32 0.70710677, %v2181_v40  ;;  %v866_v46 = vmul.f32 %v802_v39, %v610_v38  ;;  %v617_v36 = vmul.f32 0.5, %v2181_v40 }
 0x174   : > { %v1546_v47 = vpop.eup %1545  ;;  %v803_v49 = vadd.f32 1.0, %v1544_v44  ;;  %v682_v50 = vmul.f32 0.70710677, %v2184_v43  ;;  %v448_v51 = vpop.f32.mrb[10].mxu0  ;;  %v618_v34 = vmul.f32 0.5, %v2184_v43 }
 0x175   : > { %v804_v54 = vadd.f32 1.0, %v1546_v47  ;;  %1555 = verf.f32 %v681_v45  ;;  %v2189_v55 = vadd.f32 %v448_v51, %v2165_v9  ;;  %v450_v56 = vpop.f32.mrb[11].mxu0  ;;  %1032 = vmatprep.mubr.f32.mxu0 %v866_v46 }
 0x176   : > { %1557 = verf.f32 %v682_v50  ;;  %v2192_v58 = vadd.f32 %v450_v56, %v2167_v10  ;;  %1033 = vmatmul.mubr.f32.vlgmr.msra.gmra.mrb[64].mxu0 %v865_v48  ;;  %v867_v2 = vmul.f32 %v803_v49, %v611_v57 }
 0x177   : > { %v1548_v59 = vpop.eup %1547  ;;  %v683_v60 = vmul.f32 0.70710677, %v2189_v55  ;;  %v868_v61 = vmul.f32 %v804_v54, %v612_v52  ;;  %v619_v50 = vmul.f32 0.5, %v2189_v55 }
 0x178   : > { %v1550_v62 = vpop.eup %1549  ;;  %v805_v63 = vadd.f32 1.0, %v1548_v59  ;;  %v684_v1 = vmul.f32 0.70710677, %v2192_v58  ;;  %v454_v53 = vpop.f32.mrb[12].mxu0  ;;  %v620_v43 = vmul.f32 0.5, %v2192_v58 }
 0x179   : > { %v806_v4 = vadd.f32 1.0, %v1550_v62  ;;  %1559 = verf.f32 %v683_v60  ;;  %v2197_v5 = vadd.f32 %v454_v53, %v2165_v9  ;;  %v456_v6 = vpop.f32.mrb[13].mxu0  ;;  %1037 = vmatprep.mubr.f32.mxu0 %v868_v61 }
 0x17a   : > { %1561 = verf.f32 %v684_v1  ;;  %v2200_v8 = vadd.f32 %v456_v6, %v2167_v10  ;;  %1038 = vmatmul.mubr.f32.gmra.mrb[66].mxu0 %v867_v2  ;;  %v869_v17 = vmul.f32 %v805_v63, %v613_v7 }
 0x17b   : > { %v1552_v11 = vpop.eup %1551  ;;  %v685_v12 = vmul.f32 0.70710677, %v2197_v5  ;;  %v870_v13 = vmul.f32 %v806_v4, %v614_v3  ;;  %v621_v53 = vmul.f32 0.5, %v2197_v5 }
 0x17c   : > { %v1554_v0 = vpop.eup %1553  ;;  %v807_v14 = vadd.f32 1.0, %v1552_v11  ;;  %v686_v15 = vmul.f32 0.70710677, %v2200_v8  ;;  %v460_v16 = vpop.f32.mrb[14].mxu0  ;;  %v622_v62 = vmul.f32 0.5, %v2200_v8 }
 0x17d   : > { %v808_v19 = vadd.f32 1.0, %v1554_v0  ;;  %1563 = verf.f32 %v685_v12  ;;  %v2205_v20 = vadd.f32 %v460_v16, %v2165_v9  ;;  %v462_v21 = vpop.f32.mrb[15].mxu0  ;;  %1042 = vmatprep.mubr.f32.mxu0 %v870_v13 }
 0x17e   : > { %1565 = verf.f32 %v686_v15  ;;  %v2209_v23 = vadd.f32 %v462_v21, %v2167_v10  ;;  %1043 = vmatmul.mubr.f32.gmra.mrb[68].mxu0 %v869_v17  ;;  %v871_v32 = vmul.f32 %v807_v14, %v615_v22 }
 0x17f   : > { %v1556_v24 = vpop.eup %1555  ;;  %v687_v25 = vmul.f32 0.70710677, %v2205_v20  ;;  %v872_v26 = vmul.f32 %v808_v19, %v616_v18  ;;  %v623_v16 = vmul.f32 0.5, %v2205_v20 }
 0x180   : > { %v1558_v27 = vpop.eup %1557  ;;  %v809_v28 = vadd.f32 1.0, %v1556_v24  ;;  %v688_v30 = vmul.f32 0.70710677, %v2209_v23  ;;  %v466_v31 = vpop.f32.mrb[16].mxu0  ;;  %v624_v0 = vmul.f32 0.5, %v2209_v23 }
 0x181   : > { %1567 = verf.f32 %v687_v25  ;;  %v2214_v33 = vadd.f32 %v466_v31, %v2165_v9  ;;  %v468_v29 = vpop.f32.mrb[17].mxu0  ;;  %1047 = vmatprep.mubr.f32.mxu0 %v872_v26  ;;  %v810_v35 = vadd.f32 1.0, %v1558_v27 }
 0x182   : > { %1569 = verf.f32 %v688_v30  ;;  %v2219_v37 = vadd.f32 %v468_v29, %v2167_v10  ;;  %1048 = vmatmul.mubr.f32.gmra.mrb[70].mxu0 %v871_v32  ;;  %v873_v47 = vmul.f32 %v809_v28, %v617_v36 }
 0x183   : > { %v1560_v38 = vpop.eup %1559  ;;  %v689_v39 = vmul.f32 0.70710677, %v2214_v33  ;;  %v874_v41 = vmul.f32 %v810_v35, %v618_v34  ;;  %v625_v31 = vmul.f32 0.5, %v2214_v33 }
 0x184   : > { %v1562_v42 = vpop.eup %1561  ;;  %v811_v44 = vadd.f32 1.0, %v1560_v38  ;;  %v690_v45 = vmul.f32 0.70710677, %v2219_v37  ;;  %v472_v46 = vpop.f32.mrb[18].mxu0  ;;  %v626_v27 = vmul.f32 0.5, %v2219_v37 }
 0x185   : > { %v812_v48 = vadd.f32 1.0, %v1562_v42  ;;  %1571 = verf.f32 %v689_v39  ;;  %v2225_v40 = vadd.f32 %v472_v46, %v2165_v9  ;;  %v474_v49 = vpop.f32.mrb[19].mxu0  ;;  %1052 = vmatprep.mubr.f32.mxu1 %v874_v41 }
 0x186   : > { %1573 = verf.f32 %v690_v45  ;;  %v2229_v51 = vadd.f32 %v474_v49, %v2167_v10  ;;  %1053 = vmatmul.mubr.f32.vlgmr.msra.gmra.mrb[0].mxu1 %v873_v47  ;;  %v875_v61 = vmul.f32 %v811_v44, %v619_v50 }
 0x187   : > { %v1564_v52 = vpop.eup %1563  ;;  %v691_v54 = vmul.f32 0.70710677, %v2225_v40  ;;  %v876_v56 = vmul.f32 %v812_v48, %v620_v43  ;;  %v627_v46 = vmul.f32 0.5, %v2225_v40 }
 0x188   : > { %v1566_v57 = vpop.eup %1565  ;;  %v813_v58 = vadd.f32 1.0, %v1564_v52  ;;  %v692_v59 = vmul.f32 0.70710677, %v2229_v51  ;;  %v478_v60 = vpop.f32.mrb[20].mxu0  ;;  %v628_v42 = vmul.f32 0.5, %v2229_v51 }
 0x189   : > { %v814_v63 = vadd.f32 1.0, %v1566_v57  ;;  %1575 = verf.f32 %v691_v54  ;;  %v2235_v55 = vadd.f32 %v478_v60, %v2165_v9  ;;  %v480_v1 = vpop.f32.mrb[21].mxu0  ;;  %1057 = vmatprep.mubr.f32.mxu1 %v876_v56 }
 0x18a   : > { %1577 = verf.f32 %v692_v59  ;;  %v2239_v2 = vadd.f32 %v480_v1, %v2167_v10  ;;  %1058 = vmatmul.mubr.f32.gmra.mrb[2].mxu1 %v875_v61  ;;  %v877_v13 = vmul.f32 %v813_v58, %v621_v53 }
 0x18b   : > { %v1568_v3 = vpop.eup %1567  ;;  %v693_v4 = vmul.f32 0.70710677, %v2235_v55  ;;  %v878_v6 = vmul.f32 %v814_v63, %v622_v62  ;;  %v629_v60 = vmul.f32 0.5, %v2235_v55 }
 0x18c   : > { %v1570_v7 = vpop.eup %1569  ;;  %v815_v8 = vadd.f32 1.0, %v1568_v3  ;;  %v694_v11 = vmul.f32 0.70710677, %v2239_v2  ;;  %v484_v12 = vpop.f32.mrb[22].mxu0  ;;  %v630_v57 = vmul.f32 0.5, %v2239_v2 }
 0x18d   : > { %v816_v14 = vadd.f32 1.0, %v1570_v7  ;;  %1579 = verf.f32 %v693_v4  ;;  %v2245_v5 = vadd.f32 %v484_v12, %v2165_v9  ;;  %v486_v15 = vpop.f32.mrb[23].mxu0  ;;  %1062 = vmatprep.mubr.f32.mxu1 %v878_v6 }
 0x18e   : > { %1581 = verf.f32 %v694_v11  ;;  %v2249_v17 = vadd.f32 %v486_v15, %v2167_v10  ;;  %1063 = vmatmul.mubr.f32.gmra.mrb[4].mxu1 %v877_v13  ;;  %v879_v26 = vmul.f32 %v815_v8, %v623_v16 }
 0x18f   : > { %v1572_v18 = vpop.eup %1571  ;;  %v695_v19 = vmul.f32 0.70710677, %v2245_v5  ;;  %v880_v21 = vmul.f32 %v816_v14, %v624_v0  ;;  %v631_v12 = vmul.f32 0.5, %v2245_v5 }
 0x190   : > { %v1574_v22 = vpop.eup %1573  ;;  %v817_v23 = vadd.f32 1.0, %v1572_v18  ;;  %v696_v24 = vmul.f32 0.70710677, %v2249_v17  ;;  %v490_v25 = vpop.f32.mrb[24].mxu0  ;;  %v632_v7 = vmul.f32 0.5, %v2249_v17 }
 0x191   : > { %v818_v28 = vadd.f32 1.0, %v1574_v22  ;;  %1583 = verf.f32 %v695_v19  ;;  %v2255_v20 = vadd.f32 %v490_v25, %v2165_v9  ;;  %v492_v30 = vpop.f32.mrb[25].mxu0  ;;  %1067 = vmatprep.mubr.f32.mxu1 %v880_v21 }
 0x192   : > { %1585 = verf.f32 %v696_v24  ;;  %v2259_v32 = vadd.f32 %v492_v30, %v2167_v10  ;;  %1068 = vmatmul.mubr.f32.gmra.mrb[6].mxu1 %v879_v26  ;;  %v881_v41 = vmul.f32 %v817_v23, %v625_v31 }
 0x193   : > { %v1576_v29 = vpop.eup %1575  ;;  %v697_v34 = vmul.f32 0.70710677, %v2255_v20  ;;  %v882_v35 = vmul.f32 %v818_v28, %v626_v27  ;;  %v633_v25 = vmul.f32 0.5, %v2255_v20 }
 0x194   : > { %v1578_v36 = vpop.eup %1577  ;;  %v819_v37 = vadd.f32 1.0, %v1576_v29  ;;  %v698_v38 = vmul.f32 0.70710677, %v2259_v32  ;;  %v496_v39 = vpop.f32.mrb[26].mxu0  ;;  %v634_v22 = vmul.f32 0.5, %v2259_v32 }
 0x195   : > { %v820_v44 = vadd.f32 1.0, %v1578_v36  ;;  %1587 = verf.f32 %v697_v34  ;;  %v2265_v33 = vadd.f32 %v496_v39, %v2165_v9  ;;  %v498_v45 = vpop.f32.mrb[27].mxu0  ;;  %1072 = vmatprep.mubr.f32.mxu1 %v882_v35 }
 0x196   : > { %1589 = verf.f32 %v698_v38  ;;  %v2269_v47 = vadd.f32 %v498_v45, %v2167_v10  ;;  %1073 = vmatmul.mubr.f32.gmra.mrb[8].mxu1 %v881_v41  ;;  %v883_v56 = vmul.f32 %v819_v37, %v627_v46 }
 0x197   : > { %v1580_v43 = vpop.eup %1579  ;;  %v699_v48 = vmul.f32 0.70710677, %v2265_v33  ;;  %v884_v49 = vmul.f32 %v820_v44, %v628_v42  ;;  %v635_v39 = vmul.f32 0.5, %v2265_v33 }
 0x198   : > { %v1582_v50 = vpop.eup %1581  ;;  %v821_v51 = vadd.f32 1.0, %v1580_v43  ;;  %v700_v52 = vmul.f32 0.70710677, %v2269_v47  ;;  %v502_v54 = vpop.f32.mrb[28].mxu0  ;;  %v636_v36 = vmul.f32 0.5, %v2269_v47 }
 0x199   : > { %v822_v58 = vadd.f32 1.0, %v1582_v50  ;;  %1591 = verf.f32 %v699_v48  ;;  %v2275_v40 = vadd.f32 %v502_v54, %v2165_v9  ;;  %v504_v59 = vpop.f32.mrb[29].mxu0  ;;  %1077 = vmatprep.mubr.f32.mxu1 %v884_v49 }
 0x19a   : > { %1593 = verf.f32 %v700_v52  ;;  %v2279_v61 = vadd.f32 %v504_v59, %v2167_v10  ;;  %1078 = vmatmul.mubr.f32.gmra.mrb[10].mxu1 %v883_v56  ;;  %v885_v6 = vmul.f32 %v821_v51, %v629_v60 }
 0x19b   : > { %v1584_v62 = vpop.eup %1583  ;;  %v701_v63 = vmul.f32 0.70710677, %v2275_v40  ;;  %v886_v1 = vmul.f32 %v822_v58, %v630_v57  ;;  %v637_v54 = vmul.f32 0.5, %v2275_v40 }
 0x19c   : > { %v1586_v53 = vpop.eup %1585  ;;  %v823_v2 = vadd.f32 1.0, %v1584_v62  ;;  %v702_v3 = vmul.f32 0.70710677, %v2279_v61  ;;  %v508_v4 = vpop.f32.mrb[30].mxu0  ;;  %v638_v50 = vmul.f32 0.5, %v2279_v61 }
 0x19d   : > { %v824_v8 = vadd.f32 1.0, %v1586_v53  ;;  %1595 = verf.f32 %v701_v63  ;;  %v2285_v55 = vadd.f32 %v508_v4, %v2165_v9  ;;  %v510_v11 = vpop.f32.mrb[31].mxu0  ;;  %1082 = vmatprep.mubr.f32.mxu1 %v886_v1 }
 0x19e   : > { %1597 = verf.f32 %v702_v3  ;;  %v2289_v13 = vadd.f32 %v510_v11, %v2167_v10  ;;  %1083 = vmatmul.mubr.f32.gmra.mrb[12].mxu1 %v885_v6  ;;  %v887_v21 = vmul.f32 %v823_v2, %v631_v12 }
 0x19f   : > { %v1588_v0 = vpop.eup %1587  ;;  %v703_v14 = vmul.f32 0.70710677, %v2285_v55  ;;  %v888_v15 = vmul.f32 %v824_v8, %v632_v7  ;;  %v639_v4 = vmul.f32 0.5, %v2285_v55 }
 0x1a0   : > { %v1590_v16 = vpop.eup %1589  ;;  %v825_v17 = vadd.f32 1.0, %v1588_v0  ;;  %v704_v18 = vmul.f32 0.70710677, %v2289_v13  ;;  %v514_v19 = vpop.f32.mrb[32].mxu0  ;;  %v640_v53 = vmul.f32 0.5, %v2289_v13 }
 0x1a1   : > { %v826_v23 = vadd.f32 1.0, %v1590_v16  ;;  %1599 = verf.f32 %v703_v14  ;;  %v2295_v5 = vadd.f32 %v514_v19, %v2165_v9  ;;  %v516_v24 = vpop.f32.mrb[33].mxu0  ;;  %1087 = vmatprep.mubr.f32.mxu1 %v888_v15 }
 0x1a2   : > { %1601 = verf.f32 %v704_v18  ;;  %v2299_v26 = vadd.f32 %v516_v24, %v2167_v10  ;;  %1088 = vmatmul.mubr.f32.gmra.mrb[14].mxu1 %v887_v21  ;;  %v889_v35 = vmul.f32 %v825_v17, %v633_v25 }
 0x1a3   : > { %v1592_v27 = vpop.eup %1591  ;;  %v705_v28 = vmul.f32 0.70710677, %v2295_v5  ;;  %v890_v30 = vmul.f32 %v826_v23, %v634_v22  ;;  %v641_v19 = vmul.f32 0.5, %v2295_v5 }
 0x1a4   : > { %v1594_v31 = vpop.eup %1593  ;;  %v827_v32 = vadd.f32 1.0, %v1592_v27  ;;  %v706_v29 = vmul.f32 0.70710677, %v2299_v26  ;;  %v520_v34 = vpop.f32.mrb[34].mxu0  ;;  %v642_v16 = vmul.f32 0.5, %v2299_v26 }
 0x1a5   : > { %v828_v37 = vadd.f32 1.0, %v1594_v31  ;;  %1603 = verf.f32 %v705_v28  ;;  %v2305_v20 = vadd.f32 %v520_v34, %v2165_v9  ;;  %v522_v38 = vpop.f32.mrb[35].mxu0  ;;  %1092 = vmatprep.mubr.f32.mxu1 %v890_v30 }
 0x1a6   : > { %1605 = verf.f32 %v706_v29  ;;  %v2309_v41 = vadd.f32 %v522_v38, %v2167_v10  ;;  %1093 = vmatmul.mubr.f32.gmra.mrb[16].mxu1 %v889_v35  ;;  %v891_v49 = vmul.f32 %v827_v32, %v635_v39 }
 0x1a7   : > { %v1596_v42 = vpop.eup %1595  ;;  %v707_v44 = vmul.f32 0.70710677, %v2305_v20  ;;  %v892_v45 = vmul.f32 %v828_v37, %v636_v36  ;;  %v643_v34 = vmul.f32 0.5, %v2305_v20 }
 0x1a8   : > { %v1598_v46 = vpop.eup %1597  ;;  %v829_v47 = vadd.f32 1.0, %v1596_v42  ;;  %v708_v43 = vmul.f32 0.70710677, %v2309_v41  ;;  %v526_v48 = vpop.f32.mrb[36].mxu0  ;;  %v644_v31 = vmul.f32 0.5, %v2309_v41 }
 0x1a9   : > { %v830_v51 = vadd.f32 1.0, %v1598_v46  ;;  %1607 = verf.f32 %v707_v44  ;;  %v2315_v33 = vadd.f32 %v526_v48, %v2165_v9  ;;  %v528_v52 = vpop.f32.mrb[37].mxu0  ;;  %1097 = vmatprep.mubr.f32.mxu1 %v892_v45 }
 0x1aa   : > { %1609 = verf.f32 %v708_v43  ;;  %v2319_v56 = vadd.f32 %v528_v52, %v2167_v10  ;;  %1098 = vmatmul.mubr.f32.gmra.mrb[18].mxu1 %v891_v49  ;;  %v893_v1 = vmul.f32 %v829_v47, %v637_v54 }
 0x1ab   : > { %v1600_v57 = vpop.eup %1599  ;;  %v709_v58 = vmul.f32 0.70710677, %v2315_v33  ;;  %v894_v59 = vmul.f32 %v830_v51, %v638_v50  ;;  %v645_v48 = vmul.f32 0.5, %v2315_v33 }
 0x1ac   : > { %v1602_v60 = vpop.eup %1601  ;;  %v831_v61 = vadd.f32 1.0, %v1600_v57  ;;  %v710_v62 = vmul.f32 0.70710677, %v2319_v56  ;;  %v532_v63 = vpop.f32.mrb[38].mxu0  ;;  %v646_v46 = vmul.f32 0.5, %v2319_v56 }
 0x1ad   : > { %v832_v2 = vadd.f32 1.0, %v1602_v60  ;;  %1611 = verf.f32 %v709_v58  ;;  %v2325_v40 = vadd.f32 %v532_v63, %v2165_v9  ;;  %v534_v3 = vpop.f32.mrb[39].mxu0  ;;  %1102 = vmatprep.mubr.f32.mxu1 %v894_v59 }
 0x1ae   : > { %1613 = verf.f32 %v710_v62  ;;  %v2329_v6 = vadd.f32 %v534_v3, %v2167_v10  ;;  %1103 = vmatmul.mubr.f32.gmra.mrb[20].mxu1 %v893_v1  ;;  %v895_v15 = vmul.f32 %v831_v61, %v639_v4 }
 0x1af   : > { %v1604_v7 = vpop.eup %1603  ;;  %v711_v8 = vmul.f32 0.70710677, %v2325_v40  ;;  %v896_v11 = vmul.f32 %v832_v2, %v640_v53  ;;  %v647_v63 = vmul.f32 0.5, %v2325_v40 }
 0x1b0   : > { %v1606_v12 = vpop.eup %1605  ;;  %v833_v13 = vadd.f32 1.0, %v1604_v7  ;;  %v712_v0 = vmul.f32 0.70710677, %v2329_v6  ;;  %v538_v14 = vpop.f32.mrb[40].mxu0  ;;  %v648_v60 = vmul.f32 0.5, %v2329_v6 }
 0x1b1   : > { %v834_v17 = vadd.f32 1.0, %v1606_v12  ;;  %1615 = verf.f32 %v711_v8  ;;  %v2335_v55 = vadd.f32 %v538_v14, %v2165_v9  ;;  %v540_v18 = vpop.f32.mrb[41].mxu0  ;;  %1107 = vmatprep.mubr.f32.mxu1 %v896_v11 }
 0x1b2   : > { %1617 = verf.f32 %v712_v0  ;;  %v2339_v21 = vadd.f32 %v540_v18, %v2167_v10  ;;  %1108 = vmatmul.mubr.f32.gmra.mrb[22].mxu1 %v895_v15  ;;  %v897_v30 = vmul.f32 %v833_v13, %v641_v19 }
 0x1b3   : > { %v1608_v22 = vpop.eup %1607  ;;  %v713_v23 = vmul.f32 0.70710677, %v2335_v55  ;;  %v898_v24 = vmul.f32 %v834_v17, %v642_v16  ;;  %v649_v14 = vmul.f32 0.5, %v2335_v55 }
 0x1b4   : > { %v1610_v25 = vpop.eup %1609  ;;  %v835_v26 = vadd.f32 1.0, %v1608_v22  ;;  %v714_v27 = vmul.f32 0.70710677, %v2339_v21  ;;  %v544_v28 = vpop.f32.mrb[42].mxu0  ;;  %v650_v12 = vmul.f32 0.5, %v2339_v21 }
 0x1b5   : > { %v836_v32 = vadd.f32 1.0, %v1610_v25  ;;  %1619 = verf.f32 %v713_v23  ;;  %v2345_v5 = vadd.f32 %v544_v28, %v2165_v9  ;;  %v546_v29 = vpop.f32.mrb[43].mxu0  ;;  %1112 = vmatprep.mubr.f32.mxu1 %v898_v24 }
 0x1b6   : > { %1621 = verf.f32 %v714_v27  ;;  %v2349_v35 = vadd.f32 %v546_v29, %v2167_v10  ;;  %1113 = vmatmul.mubr.f32.gmra.mrb[24].mxu1 %v897_v30  ;;  %v899_v45 = vmul.f32 %v835_v26, %v643_v34 }
 0x1b7   : > { %v1612_v36 = vpop.eup %1611  ;;  %v715_v37 = vmul.f32 0.70710677, %v2345_v5  ;;  %v900_v38 = vmul.f32 %v836_v32, %v644_v31  ;;  %v651_v28 = vmul.f32 0.5, %v2345_v5 }
 0x1b8   : > { %v1614_v39 = vpop.eup %1613  ;;  %v837_v41 = vadd.f32 1.0, %v1612_v36  ;;  %v716_v42 = vmul.f32 0.70710677, %v2349_v35  ;;  %v550_v44 = vpop.f32.mrb[44].mxu0  ;;  %v652_v25 = vmul.f32 0.5, %v2349_v35 }
 0x1b9   : > { %v838_v47 = vadd.f32 1.0, %v1614_v39  ;;  %1623 = verf.f32 %v715_v37  ;;  %v2355_v20 = vadd.f32 %v550_v44, %v2165_v9  ;;  %v552_v43 = vpop.f32.mrb[45].mxu0  ;;  %1117 = vmatprep.mubr.f32.mxu1 %v900_v38 }
 0x1ba   : > { %1625 = verf.f32 %v716_v42  ;;  %v2359_v49 = vadd.f32 %v552_v43, %v2167_v10  ;;  %1118 = vmatmul.mubr.f32.gmra.mrb[26].mxu1 %v899_v45  ;;  %v901_v59 = vmul.f32 %v837_v41, %v645_v48 }
 0x1bb   : > { %v1616_v50 = vpop.eup %1615  ;;  %v717_v51 = vmul.f32 0.70710677, %v2355_v20  ;;  %v902_v52 = vmul.f32 %v838_v47, %v646_v46  ;;  %v653_v44 = vmul.f32 0.5, %v2355_v20 }
 0x1bc   : > { %v1618_v54 = vpop.eup %1617  ;;  %v839_v56 = vadd.f32 1.0, %v1616_v50  ;;  %v718_v57 = vmul.f32 0.70710677, %v2359_v49  ;;  %v556_v58 = vpop.f32.mrb[46].mxu0  ;;  %v654_v39 = vmul.f32 0.5, %v2359_v49 }
 0x1bd   : > { %v840_v61 = vadd.f32 1.0, %v1618_v54  ;;  %1627 = verf.f32 %v717_v51  ;;  %v2365_v33 = vadd.f32 %v556_v58, %v2165_v9  ;;  %v558_v62 = vpop.f32.mrb[47].mxu0  ;;  %1122 = vmatprep.mubr.f32.mxu1 %v902_v52 }
 0x1be   : > { %1629 = verf.f32 %v718_v57  ;;  %v2369_v1 = vadd.f32 %v558_v62, %v2167_v10  ;;  %1123 = vmatmul.mubr.f32.gmra.mrb[28].mxu1 %v901_v59  ;;  %v903_v11 = vmul.f32 %v839_v56, %v647_v63 }
 0x1bf   : > { %v1620_v53 = vpop.eup %1619  ;;  %v719_v2 = vmul.f32 0.70710677, %v2365_v33  ;;  %v904_v3 = vmul.f32 %v840_v61, %v648_v60  ;;  %v655_v58 = vmul.f32 0.5, %v2365_v33 }
 0x1c0   : > { %v1622_v4 = vpop.eup %1621  ;;  %v841_v6 = vadd.f32 1.0, %v1620_v53  ;;  %v720_v7 = vmul.f32 0.70710677, %v2369_v1  ;;  %v562_v8 = vpop.f32.mrb[48].mxu0  ;;  %v656_v54 = vmul.f32 0.5, %v2369_v1 }
 0x1c1   : > { %v842_v13 = vadd.f32 1.0, %v1622_v4  ;;  %1631 = verf.f32 %v719_v2  ;;  %v2375_v40 = vadd.f32 %v562_v8, %v2165_v9  ;;  %v564_v0 = vpop.f32.mrb[49].mxu0  ;;  %1127 = vmatprep.mubr.f32.mxu1 %v904_v3 }
 0x1c2   : > { %1633 = verf.f32 %v720_v7  ;;  %v2379_v15 = vadd.f32 %v564_v0, %v2167_v10  ;;  %1128 = vmatmul.mubr.f32.gmra.mrb[30].mxu1 %v903_v11  ;;  %v905_v24 = vmul.f32 %v841_v6, %v649_v14 }
 0x1c3   : > { %v1624_v16 = vpop.eup %1623  ;;  %v721_v17 = vmul.f32 0.70710677, %v2375_v40  ;;  %v906_v18 = vmul.f32 %v842_v13, %v650_v12  ;;  %v657_v8 = vmul.f32 0.5, %v2375_v40 }
 0x1c4   : > { %v1626_v19 = vpop.eup %1625  ;;  %v843_v21 = vadd.f32 1.0, %v1624_v16  ;;  %v722_v22 = vmul.f32 0.70710677, %v2379_v15  ;;  %v568_v23 = vpop.f32.mrb[50].mxu0  ;;  %v658_v4 = vmul.f32 0.5, %v2379_v15 }
 0x1c5   : > { %v844_v26 = vadd.f32 1.0, %v1626_v19  ;;  %1635 = verf.f32 %v721_v17  ;;  %v2385_v55 = vadd.f32 %v568_v23, %v2165_v9  ;;  %v570_v27 = vpop.f32.mrb[51].mxu0  ;;  %1132 = vmatprep.mubr.f32.mxu1 %v906_v18 }
 0x1c6   : > { %1637 = verf.f32 %v722_v22  ;;  %v2389_v30 = vadd.f32 %v570_v27, %v2167_v10  ;;  %1133 = vmatmul.mubr.f32.gmra.mrb[32].mxu1 %v905_v24  ;;  %v907_v38 = vmul.f32 %v843_v21, %v651_v28 }
 0x1c7   : > { %v1628_v31 = vpop.eup %1627  ;;  %v723_v32 = vmul.f32 0.70710677, %v2385_v55  ;;  %v908_v29 = vmul.f32 %v844_v26, %v652_v25  ;;  %v659_v23 = vmul.f32 0.5, %v2385_v55 }
 0x1c8   : > { %v1630_v34 = vpop.eup %1629  ;;  %v845_v35 = vadd.f32 1.0, %v1628_v31  ;;  %v724_v36 = vmul.f32 0.70710677, %v2389_v30  ;;  %v574_v37 = vpop.f32.mrb[52].mxu0  ;;  %v660_v19 = vmul.f32 0.5, %v2389_v30 }
 0x1c9   : > { %v846_v41 = vadd.f32 1.0, %v1630_v34  ;;  %1639 = verf.f32 %v723_v32  ;;  %v2395_v5 = vadd.f32 %v574_v37, %v2165_v9  ;;  %v576_v42 = vpop.f32.mrb[53].mxu0  ;;  %1137 = vmatprep.mubr.f32.mxu1 %v908_v29 }
 0x1ca   : > { %1641 = verf.f32 %v724_v36  ;;  %v2399_v45 = vadd.f32 %v576_v42, %v2167_v10  ;;  %1138 = vmatmul.mubr.f32.gmra.mrb[34].mxu1 %v907_v38  ;;  %v909_v52 = vmul.f32 %v845_v35, %v653_v44 }
 0x1cb   : > { %v1632_v46 = vpop.eup %1631  ;;  %v725_v47 = vmul.f32 0.70710677, %v2395_v5  ;;  %v910_v43 = vmul.f32 %v846_v41, %v654_v39  ;;  %v661_v37 = vmul.f32 0.5, %v2395_v5 }
 0x1cc   : > { %v1634_v48 = vpop.eup %1633  ;;  %v847_v49 = vadd.f32 1.0, %v1632_v46  ;;  %v726_v50 = vmul.f32 0.70710677, %v2399_v45  ;;  %v580_v51 = vpop.f32.mrb[54].mxu0  ;;  %v662_v34 = vmul.f32 0.5, %v2399_v45 }
 0x1cd   : > { %v848_v56 = vadd.f32 1.0, %v1634_v48  ;;  %1643 = verf.f32 %v725_v47  ;;  %v2405_v20 = vadd.f32 %v580_v51, %v2165_v9  ;;  %v582_v57 = vpop.f32.mrb[55].mxu0  ;;  %1142 = vmatprep.mubr.f32.mxu1 %v910_v43 }
 0x1ce   : > { %1645 = verf.f32 %v726_v50  ;;  %v2409_v59 = vadd.f32 %v582_v57, %v2167_v10  ;;  %1143 = vmatmul.mubr.f32.gmra.mrb[36].mxu1 %v909_v52  ;;  %v911_v3 = vmul.f32 %v847_v49, %v655_v58 }
 0x1cf   : > { %v1636_v60 = vpop.eup %1635  ;;  %v727_v61 = vmul.f32 0.70710677, %v2405_v20  ;;  %v912_v62 = vmul.f32 %v848_v56, %v656_v54  ;;  %v663_v5 = vmul.f32 0.5, %v2405_v20 }
 0x1d0   : > { %v1638_v63 = vpop.eup %1637  ;;  %v849_v1 = vadd.f32 1.0, %v1636_v60  ;;  %v728_v53 = vmul.f32 0.70710677, %v2409_v59  ;;  %v586_v2 = vpop.f32.mrb[56].mxu0  ;;  %v664_v48 = vmul.f32 0.5, %v2409_v59 }
 0x1d1   : > { %v850_v6 = vadd.f32 1.0, %v1638_v63  ;;  %1647 = verf.f32 %v727_v61  ;;  %v2415_v33 = vadd.f32 %v586_v2, %v2165_v9  ;;  %v588_v7 = vpop.f32.mrb[57].mxu0  ;;  %1147 = vmatprep.mubr.f32.mxu1 %v912_v62 }
 0x1d2   : > { %1649 = verf.f32 %v728_v53  ;;  %v2419_v11 = vadd.f32 %v588_v7, %v2167_v10  ;;  %1148 = vmatmul.mubr.f32.gmra.mrb[38].mxu1 %v911_v3  ;;  %v913_v18 = vmul.f32 %v849_v1, %v657_v8 }
 0x1d3   : > { %v1640_v12 = vpop.eup %1639  ;;  %v729_v13 = vmul.f32 0.70710677, %v2415_v33  ;;  %v914_v0 = vmul.f32 %v850_v6, %v658_v4 }
 0x1d4   : > { %v1642_v14 = vpop.eup %1641  ;;  %v851_v15 = vadd.f32 1.0, %v1640_v12  ;;  %v730_v16 = vmul.f32 0.70710677, %v2419_v11  ;;  %v592_v17 = vpop.f32.mrb[58].mxu0  ;;  %v666_v59 = vmul.f32 0.5, %v2419_v11 }
 0x1d5   : > { %v852_v21 = vadd.f32 1.0, %v1642_v14  ;;  %1651 = verf.f32 %v729_v13  ;;  %v2425_v40 = vadd.f32 %v592_v17, %v2165_v9  ;;  %v594_v22 = vpop.f32.mrb[59].mxu0  ;;  %1152 = vmatprep.mubr.f32.mxu1 %v914_v0 }
 0x1d6   : > { %1653 = verf.f32 %v730_v16  ;;  %v595_v24 = vadd.f32 %v594_v22, %v2167_v10  ;;  %1153 = vmatmul.mubr.f32.gmra.mrb[40].mxu1 %v913_v18  ;;  %v915_v29 = vmul.f32 %v851_v15, %v659_v23 }
 0x1d7   : > { %v1644_v25 = vpop.eup %1643  ;;  %v731_v26 = vmul.f32 0.70710677, %v2425_v40  ;;  %v916_v27 = vmul.f32 %v852_v21, %v660_v19  ;;  %v667_v6 = vmul.f32 0.5, %v2425_v40 }
 0x1d8   : > { %v1646_v28 = vpop.eup %1645  ;;  %v853_v31 = vadd.f32 1.0, %v1644_v25  ;;  %v732_v30 = vmul.f32 0.70710677, %v595_v24  ;;  %v598_v32 = vpop.f32.mrb[60].mxu0  ;;  %v668_v3 = vmul.f32 0.5, %v595_v24 }
 0x1d9   : > { %v854_v35 = vadd.f32 1.0, %v1646_v28  ;;  %1655 = verf.f32 %v731_v26  ;;  %v599_v36 = vadd.f32 %v598_v32, %v2165_v9  ;;  %v600_v55 = vpop.f32.mrb[61].mxu0  ;;  %1157 = vmatprep.mubr.f32.mxu1 %v916_v27  ;;  %v2444_v25 = vld [vmem:[%s2570_s5] ss:$0 sm:$0xff] }
 0x1da   : > { %1657 = verf.f32 %v732_v30  ;;  %v601_v38 = vadd.f32 %v600_v55, %v2167_v10  ;;  %1158 = vmatmul.mubr.f32.gmra.mrb[42].mxu1 %v915_v29  ;;  %v917_v45 = vmul.f32 %v853_v31, %v661_v37 }
 0x1db   : > { %v1648_v39 = vpop.eup %1647  ;;  %v733_v41 = vmul.f32 0.70710677, %v599_v36  ;;  %v918_v42 = vmul.f32 %v854_v35, %v662_v34  ;;  %v669_v14 = vmul.f32 0.5, %v599_v36 }
 0x1dc   : > { %v1650_v44 = vpop.eup %1649  ;;  %v855_v46 = vadd.f32 1.0, %v1648_v39  ;;  %v734_v47 = vmul.f32 0.70710677, %v601_v38  ;;  %v604_v43 = vpop.f32.mrb[62].mxu0  ;;  %v670_v0 = vmul.f32 0.5, %v601_v38 }
 0x1dd   : > { %v856_v49 = vadd.f32 1.0, %v1650_v44  ;;  %1659 = verf.f32 %v733_v41  ;;  %v605_v50 = vadd.f32 %v604_v43, %v2165_v9  ;;  %v606_v51 = vpop.f32.mrb[63].mxu0  ;;  %1162 = vmatprep.mubr.f32.mxu1 %v918_v42  ;;  %v665_v9 = vmul.f32 0.5, %v2415_v33 }
 0x1de   : > { %1661 = verf.f32 %v734_v47  ;;  %v607_v52 = vadd.f32 %v606_v51, %v2167_v10  ;;  %1163 = vmatmul.mubr.f32.gmra.mrb[44].mxu1 %v917_v45  ;;  %v919_v62 = vmul.f32 %v855_v46, %v663_v5 }
 0x1df   : > { %v1652_v54 = vpop.eup %1651  ;;  %v735_v56 = vmul.f32 0.70710677, %v605_v50  ;;  %v920_v57 = vmul.f32 %v856_v49, %v664_v48  ;;  %v671_v40 = vmul.f32 0.5, %v605_v50 }
 0x1e0   : > { %v1654_v58 = vpop.eup %1653  ;;  %v857_v60 = vadd.f32 1.0, %v1652_v54  ;;  %v736_v61 = vmul.f32 0.70710677, %v607_v52  ;;  %v672_v21 = vmul.f32 0.5, %v607_v52 }
 0x1e1   : > { %v858_v63 = vadd.f32 1.0, %v1654_v58  ;;  %1663 = verf.f32 %v735_v56  ;;  %1167 = vmatprep.mubr.f32.mxu1 %v920_v57 }
 0x1e2   : > { %1665 = verf.f32 %v736_v61  ;;  %1168 = vmatmul.mubr.f32.gmra.mrb[46].mxu1 %v919_v62  ;;  %v921_v2 = vmul.f32 %v857_v60, %v665_v9 }
 0x1e3   : > { %v1656_v20 = vpop.eup %1655  ;;  %v922_v1 = vmul.f32 %v858_v63, %v666_v59 }
 0x1e4   : > { %v1658_v10 = vpop.eup %1657  ;;  %v859_v53 = vadd.f32 1.0, %v1656_v20 }
 0x1e5   : > { %v860_v4 = vadd.f32 1.0, %v1658_v10  ;;  %1172 = vmatprep.mubr.f32.mxu1 %v922_v1 }
 0x1e6   : > { %1173 = vmatmul.mubr.f32.gmra.mrb[48].mxu1 %v921_v2  ;;  %v923_v13 = vmul.f32 %v859_v53, %v667_v6 }
 0x1e7   : > { %v1660_v7 = vpop.eup %1659  ;;  %v924_v8 = vmul.f32 %v860_v4, %v668_v3 }
 0x1e8   : > { %v1662_v11 = vpop.eup %1661  ;;  %v861_v12 = vadd.f32 1.0, %v1660_v7 }
 0x1e9   : > { %v862_v33 = vadd.f32 1.0, %v1662_v11  ;;  %1177 = vmatprep.mubr.f32.mxu1 %v924_v8 }
 0x1ea   : > { %1178 = vmatmul.mubr.f32.gmra.mrb[50].mxu1 %v923_v13  ;;  %v925_v19 = vmul.f32 %v861_v12, %v669_v14 }
 0x1eb   : > { %v1664_v15 = vpop.eup %1663  ;;  %v926_v16 = vmul.f32 %v862_v33, %v670_v0 }
 0x1ec   : > { %v1666_v17 = vpop.eup %1665  ;;  %v863_v18 = vadd.f32 1.0, %v1664_v15 }
 0x1ed   : > { %v864_v22 = vadd.f32 1.0, %v1666_v17  ;;  %1182 = vmatprep.mubr.f32.mxu1 %v926_v16 }
 0x1ee   : > { %1183 = vmatmul.mubr.f32.gmra.mrb[52].mxu1 %v925_v19  ;;  %v927_v24 = vmul.f32 %v863_v18, %v671_v40 }
 0x1ef   : > { %v928_v23 = vmul.f32 %v864_v22, %v672_v21 }
 0x1f1   : > { %1187 = vmatprep.mubr.f32.mxu1 %v928_v23 }
 0x1f2   : > { %1188 = vmatmul.mubr.f32.gmra.mrb[54].mxu1 %v927_v24 }
 0x249   : > { %v1034_v26 = vpop.f32.mrb[64].mxu0 }
 0x24a   : > { %v1035_v27 = vadd.f32 %v2444_v25, %v1034_v26  ;;  %v1036_v28 = vpop.f32.mrb[65].mxu0 }
 0x24c   : > { %1193 = vst [vmem:[%s2449_s13] sm:$0xff] %v1035_v27 }
 0x24d   : > { %v1039_v31 = vpop.f32.mrb[66].mxu0 }
 0x24e   : > { %v1040_v30 = vadd.f32 %v2444_v25, %v1039_v31  ;;  %v1041_v32 = vpop.f32.mrb[67].mxu0 }
 0x250   : > { %1194 = vst [vmem:[%s2449_s13 + $0x8] sm:$0xff] %v1040_v30 }
 0x251   : > { %v1044_v29 = vpop.f32.mrb[68].mxu0 }
 0x252   : > { %v1045_v34 = vadd.f32 %v2444_v25, %v1044_v29  ;;  %v1046_v35 = vpop.f32.mrb[69].mxu0 }
 0x254   : > { %1195 = vst [vmem:[%s2449_s13 + $0x10] sm:$0xff] %v1045_v34 }
 0x255   : > { %v1049_v36 = vpop.f32.mrb[70].mxu0 }
 0x256   : > { %v1050_v55 = vadd.f32 %v2444_v25, %v1049_v36  ;;  %v1051_v37 = vpop.f32.mrb[71].mxu0 }
 0x258   : > { %1196 = vst [vmem:[%s2449_s13 + $0x18] sm:$0xff] %v1050_v55 }
 0x259   : > { %v1054_v38 = vpop.f32.mrb[0].mxu1 }
 0x25a   : > { %v1055_v39 = vadd.f32 %v2444_v25, %v1054_v38  ;;  %v1056_v41 = vpop.f32.mrb[1].mxu1 }
 0x25c   : > { %1197 = vst [vmem:[%s2449_s13 + $0x20] sm:$0xff] %v1055_v39 }
 0x25d   : > { %v1059_v42 = vpop.f32.mrb[2].mxu1 }
 0x25e   : > { %v1060_v44 = vadd.f32 %v2444_v25, %v1059_v42  ;;  %v1061_v46 = vpop.f32.mrb[3].mxu1 }
 0x260   : > { %1198 = vst [vmem:[%s2449_s13 + $0x28] sm:$0xff] %v1060_v44 }
 0x261   : > { %v1064_v47 = vpop.f32.mrb[4].mxu1 }
 0x262   : > { %v1065_v43 = vadd.f32 %v2444_v25, %v1064_v47  ;;  %v1066_v45 = vpop.f32.mrb[5].mxu1 }
 0x264   : > { %1199 = vst [vmem:[%s2449_s13 + $0x30] sm:$0xff] %v1065_v43 }
 0x265   : > { %v1069_v48 = vpop.f32.mrb[6].mxu1 }
 0x266   : > { %v1070_v49 = vadd.f32 %v2444_v25, %v1069_v48  ;;  %v1071_v50 = vpop.f32.mrb[7].mxu1 }
 0x268   : > { %1200 = vst [vmem:[%s2449_s13 + $0x38] sm:$0xff] %v1070_v49 }
 0x269   : > { %v1074_v51 = vpop.f32.mrb[8].mxu1 }
 0x26a   : > { %v1075_v5 = vadd.f32 %v2444_v25, %v1074_v51  ;;  %v1076_v52 = vpop.f32.mrb[9].mxu1 }
 0x26c   : > { %1201 = vst [vmem:[%s2449_s13 + $0x40] sm:$0xff] %v1075_v5 }
 0x26d   : > { %v1079_v54 = vpop.f32.mrb[10].mxu1 }
 0x26e   : > { %v1080_v56 = vadd.f32 %v2444_v25, %v1079_v54  ;;  %v1081_v57 = vpop.f32.mrb[11].mxu1 }
 0x270   : > { %1202 = vst [vmem:[%s2449_s13 + $0x48] sm:$0xff] %v1080_v56 }
 0x271   : > { %v1084_v58 = vpop.f32.mrb[12].mxu1 }
 0x272   : > { %v1085_v60 = vadd.f32 %v2444_v25, %v1084_v58  ;;  %v1086_v61 = vpop.f32.mrb[13].mxu1 }
 0x274   : > { %1203 = vst [vmem:[%s2449_s13 + $0x50] sm:$0xff] %v1085_v60 }
 0x275   : > { %v1089_v62 = vpop.f32.mrb[14].mxu1 }
 0x276   : > { %v1090_v59 = vadd.f32 %v2444_v25, %v1089_v62  ;;  %v1091_v63 = vpop.f32.mrb[15].mxu1 }
 0x278   : > { %1204 = vst [vmem:[%s2449_s13 + $0x58] sm:$0xff] %v1090_v59 }
 0x279   : > { %v1094_v9 = vpop.f32.mrb[16].mxu1 }
 0x27a   : > { %v1095_v20 = vadd.f32 %v2444_v25, %v1094_v9  ;;  %v1096_v1 = vpop.f32.mrb[17].mxu1 }
 0x27c   : > { %1205 = vst [vmem:[%s2449_s13 + $0x60] sm:$0xff] %v1095_v20 }
 0x27d   : > { %v1099_v10 = vpop.f32.mrb[18].mxu1 }
 0x27e   : > { %v1100_v53 = vadd.f32 %v2444_v25, %v1099_v10  ;;  %v1101_v2 = vpop.f32.mrb[19].mxu1 }
 0x280   : > { %1206 = vst [vmem:[%s2449_s13 + $0x68] sm:$0xff] %v1100_v53 }
 0x281   : > { %v1104_v3 = vpop.f32.mrb[20].mxu1 }
 0x282   : > { %v1105_v4 = vadd.f32 %v2444_v25, %v1104_v3  ;;  %v1106_v6 = vpop.f32.mrb[21].mxu1 }
 0x284   : > { %1207 = vst [vmem:[%s2449_s13 + $0x70] sm:$0xff] %v1105_v4 }
 0x285   : > { %v1109_v7 = vpop.f32.mrb[22].mxu1 }
 0x286   : > { %v1110_v8 = vadd.f32 %v2444_v25, %v1109_v7  ;;  %v1111_v11 = vpop.f32.mrb[23].mxu1 }
 0x288   : > { %1208 = vst [vmem:[%s2449_s13 + $0x78] sm:$0xff] %v1110_v8 }
 0x289   : > { %v1114_v12 = vpop.f32.mrb[24].mxu1 }
 0x28a   : > { %v1115_v13 = vadd.f32 %v2444_v25, %v1114_v12  ;;  %v1116_v0 = vpop.f32.mrb[25].mxu1 }
 0x28c   : > { %1209 = vst [vmem:[%s2449_s13 + $0x80] sm:$0xff] %v1115_v13 }
 0x28d   : > { %v1119_v33 = vpop.f32.mrb[26].mxu1 }
 0x28e   : > { %v1120_v14 = vadd.f32 %v2444_v25, %v1119_v33  ;;  %v1121_v15 = vpop.f32.mrb[27].mxu1 }
 0x290   : > { %1210 = vst [vmem:[%s2449_s13 + $0x88] sm:$0xff] %v1120_v14 }
 0x291   : > { %v1124_v16 = vpop.f32.mrb[28].mxu1 }
 0x292   : > { %v1125_v17 = vadd.f32 %v2444_v25, %v1124_v16  ;;  %v1126_v18 = vpop.f32.mrb[29].mxu1 }
 0x294   : > { %1211 = vst [vmem:[%s2449_s13 + $0x90] sm:$0xff] %v1125_v17 }
 0x295   : > { %v1129_v19 = vpop.f32.mrb[30].mxu1 }
 0x296   : > { %v1130_v21 = vadd.f32 %v2444_v25, %v1129_v19  ;;  %v1131_v22 = vpop.f32.mrb[31].mxu1 }
 0x298   : > { %1212 = vst [vmem:[%s2449_s13 + $0x98] sm:$0xff] %v1130_v21 }
 0x299   : > { %v1134_v40 = vpop.f32.mrb[32].mxu1 }
 0x29a   : > { %v1135_v23 = vadd.f32 %v2444_v25, %v1134_v40  ;;  %v1136_v24 = vpop.f32.mrb[33].mxu1 }
 0x29c   : > { %1213 = vst [vmem:[%s2449_s13 + $0xa0] sm:$0xff] %v1135_v23 }
 0x29d   : > { %v1139_v26 = vpop.f32.mrb[34].mxu1 }
 0x29e   : > { %v1140_v27 = vadd.f32 %v2444_v25, %v1139_v26  ;;  %v1141_v28 = vpop.f32.mrb[35].mxu1 }
 0x2a0   : > { %1214 = vst [vmem:[%s2449_s13 + $0xa8] sm:$0xff] %v1140_v27 }
 0x2a1   : > { %v1144_v31 = vpop.f32.mrb[36].mxu1 }
 0x2a2   : > { %v1145_v30 = vadd.f32 %v2444_v25, %v1144_v31  ;;  %v1146_v32 = vpop.f32.mrb[37].mxu1 }
 0x2a4   : > { %1215 = vst [vmem:[%s2449_s13 + $0xb0] sm:$0xff] %v1145_v30 }
 0x2a5   : > { %v1149_v29 = vpop.f32.mrb[38].mxu1 }
 0x2a6   : > { %v1150_v34 = vadd.f32 %v2444_v25, %v1149_v29  ;;  %v1151_v35 = vpop.f32.mrb[39].mxu1 }
 0x2a8   : > { %1216 = vst [vmem:[%s2449_s13 + $0xb8] sm:$0xff] %v1150_v34 }
 0x2a9   : > { %v1154_v36 = vpop.f32.mrb[40].mxu1 }
 0x2aa   : > { %v1155_v55 = vadd.f32 %v2444_v25, %v1154_v36  ;;  %v1156_v37 = vpop.f32.mrb[41].mxu1 }
 0x2ac   : > { %1217 = vst [vmem:[%s2449_s13 + $0xc0] sm:$0xff] %v1155_v55 }
 0x2ad   : > { %v1159_v38 = vpop.f32.mrb[42].mxu1 }
 0x2ae   : > { %v1160_v39 = vadd.f32 %v2444_v25, %v1159_v38  ;;  %v1161_v41 = vpop.f32.mrb[43].mxu1 }
 0x2b0   : > { %1218 = vst [vmem:[%s2449_s13 + $0xc8] sm:$0xff] %v1160_v39 }
 0x2b1   : > { %v1164_v42 = vpop.f32.mrb[44].mxu1 }
 0x2b2   : > { %v1165_v44 = vadd.f32 %v2444_v25, %v1164_v42  ;;  %v1166_v46 = vpop.f32.mrb[45].mxu1 }
 0x2b4   : > { %1219 = vst [vmem:[%s2449_s13 + $0xd0] sm:$0xff] %v1165_v44 }
 0x2b5   : > { %v1169_v47 = vpop.f32.mrb[46].mxu1 }
 0x2b6   : > { %v1170_v43 = vadd.f32 %v2444_v25, %v1169_v47  ;;  %v1171_v45 = vpop.f32.mrb[47].mxu1 }
 0x2b8   : > { %1220 = vst [vmem:[%s2449_s13 + $0xd8] sm:$0xff] %v1170_v43 }
 0x2b9   : > { %v1174_v48 = vpop.f32.mrb[48].mxu1 }
 0x2ba   : > { %v1175_v49 = vadd.f32 %v2444_v25, %v1174_v48  ;;  %v1176_v50 = vpop.f32.mrb[49].mxu1 }
 0x2bc   : > { %1221 = vst [vmem:[%s2449_s13 + $0xe0] sm:$0xff] %v1175_v49 }
 0x2bd   : > { %v1179_v51 = vpop.f32.mrb[50].mxu1 }
 0x2be   : > { %v1180_v5 = vadd.f32 %v2444_v25, %v1179_v51  ;;  %v1181_v52 = vpop.f32.mrb[51].mxu1 }
 0x2c0   : > { %1222 = vst [vmem:[%s2449_s13 + $0xe8] sm:$0xff] %v1180_v5 }
 0x2c1   : > { %v1184_v54 = vpop.f32.mrb[52].mxu1 }
 0x2c2   : > { %v1185_v56 = vadd.f32 %v2444_v25, %v1184_v54  ;;  %v1186_v57 = vpop.f32.mrb[53].mxu1 }
 0x2c4   : > { %1223 = vst [vmem:[%s2449_s13 + $0xf0] sm:$0xff] %v1185_v56 }
 0x2c5   : > { %v1189_v58 = vpop.f32.mrb[54].mxu1 }
 0x2c6   : > { %v1190_v60 = vadd.f32 %v2444_v25, %v1189_v58  ;;  %v1191_v61 = vpop.f32.mrb[55].mxu1 }
 0x2c8   : > { %1224 = vst [vmem:[%s2449_s13 + $0xf8] sm:$0xff] %v1190_v60 }
 0x2c9   : > { %1766 = shalt.err (!%p1763_p2)
}
 0x2ca   : > { %s1767_s17 = scalar_lea.hbm %s2517_s14, 4096  ;;  %s1771_s15 = scalar_lea.hbm %s2571_s6, 8192 }
 0x2cb   : > { %p1768_p13 = scmp.ne.s32.totalorder %s2517_s14, %s1767_s17  ;;  %p1772_p4 = scmp.lt.u32.totalorder %s2517_s14, %s2571_s6 }
 0x2cc   : > { %p1773_p7 = scmp.lt.u32.totalorder %s1771_s15, %s1767_s17  ;;  %p1775_p11 = scmp.lt.u32.totalorder %s1767_s17, %s2517_s14 }
 0x2cd   : > { %p1769_p6 = pnand %p1768_p13, %p2585_p0 }
 0x2ce   : > { %p1774_p8 = por %p1773_p7, %p1772_p4 }
 0x2cf   : > { %p1770_p10 = pneg %p1769_p6 }
 0x2d0   : > { %p1776_p1 = por %p1775_p11, %p1774_p8 }
 0x2d2   : > { %p1777_p3 = pnand %p1776_p1, %p1770_p10 }
 0x2d4   : > { %1780 = shalt.err (!%p1777_p3)
}
 0x2d5   : > { %s1835_s30 = smov 128   ;;  %s1836_s12 = smov 8  }
 0x2d6   : > { %1474 = dma.vmem_to_hbm [thread:$0]  (%p2585_p0), %s2519_s18, 4096, %s2517_s14, %s1226_s25, %s1835_s30, %s1835_s30, %s1836_s12  }
 0x2d7 PF: > { %s1254_s8 = sand.u32 1, %s1811_s0   ;;  %p2586_p5 = scmp.ne.s32.totalorder %s2576_s27, 0 }
 0x2d8   : > { %p2587_p9 = scmp.ge.s32.totalorder %s1823_s23, 2  ;;  %s1255_s10 = scalar_lea.sflag [#allocation6], %s1254_s8 }
 0x2da   : > { %p1488_p12 = pnand %p2587_p9, %p2586_p5 }
 0x2dc   : > { %1806 = dma.done.wait (!%p1488_p12), %s1255_s10, 4096  }
 0x2dd   : > { %1808 = vsyncadd (!%p1488_p12), %s1255_s10, 4294963200  ;;  %p21_p2 = scmp.ge.s32.totalorder %s1985_s19, 4   ;;  %s2588_s0 = smov %s1815_s21 }
 0x2de   : > { %s2589_s21 = smov %s1819_s22  ;;  %s2590_s22 = smov %s1994_s29 }
 0x2df   : > { %s2591_s23 = smov %s1985_s19  ;;  %23 = sbr.rel (!%p21_p2) target bundleno = 6 (0x6), region = 93 }
 0x2e6   :  { %1260 = vsyncpa [#allocation5], 1 }
 0x2e7   :  { %1262 = vsyncpa [#allocation5 + $0x1], 1 }
 0x2e8   :  { %1263 = vsyncpa [#allocation8], 1 }
 0x2e9   :  { %1264 = vsyncpa [#allocation6], 1 }
 0x2ea   :  { %1266 = vsyncpa [#allocation6 + $0x1], 1 }

</bundles_post_ra>
